<compile_context>
chip_gen: v7x
topology: tpu7x:2x2x1
jax: 0.10.0
libtpu: 0.0.40
codegen_flags: <defaults>
</compile_context>

<pallas_src>
import functools

import jax
import jax.numpy as jnp
from jax import lax
from jax.experimental import pallas as pl
from jax.experimental.pallas import tpu as pltpu


def _round_up(x, m):
    return ((x + m - 1) // m) * m


# ----------------------------------------------------------------------------
# Kernel 1: batched input projection  (T_pad*Bp, Din) @ (Din, 3*Hp) + bias
# ----------------------------------------------------------------------------
def _proj_kernel(x_ref, w_ref, b_ref, o_ref):
    o_ref[...] = (
        jnp.dot(x_ref[...], w_ref[...], preferred_element_type=jnp.float32)
        + b_ref[...]
    )


def input_projection(x, w, b, *, m_blk):
    """x: (T_pad, Bp, Din); w: (Din, 3Hp); b: (1, 3Hp) -> (T_pad, Bp, 3Hp)."""
    t_pad, bp, din = x.shape
    g = w.shape[1]
    m = t_pad * bp
    x2 = x.reshape(m, din)

    out = pl.pallas_call(
        _proj_kernel,
        out_shape=jax.ShapeDtypeStruct((m, g), jnp.float32),
        grid_spec=pltpu.PrefetchScalarGridSpec(
            num_scalar_prefetch=0,
            grid=(m // m_blk,),
            in_specs=[
                pl.BlockSpec((m_blk, din), lambda i: (i, 0)),   # row tile of x
                pl.BlockSpec((din, g), lambda i: (0, 0)),       # full W_ih
                pl.BlockSpec((1, g), lambda i: (0, 0)),         # full b_ih
            ],
            out_specs=pl.BlockSpec((m_blk, g), lambda i: (i, 0)),
        ),
        compiler_params=pltpu.CompilerParams(
            dimension_semantics=("parallel",),   # rows are independent
        ),
    )(x2, w, b)
    return out.reshape(t_pad, bp, g)


# ----------------------------------------------------------------------------
# Kernel 2: recurrent part.  One grid step = T_BLK timesteps; hidden state is
# carried across grid steps in VMEM scratch.  Time axis MUST stay "arbitrary"
# (sequential) or the carried state breaks.
# ----------------------------------------------------------------------------
def _gru_recurrent_kernel(gi_ref, h0_ref, whh_ref, bhh_ref, out_ref, h_scratch,
                          *, hp, t_blk):
    c = pl.program_id(0)

    @pl.when(c == 0)
    def _():
        h_scratch[...] = h0_ref[...]

    whh = whh_ref[...]            # (Hp, 3Hp) -- loaded once per chunk
    bhh = bhh_ref[...]            # (1, 3Hp)

    def step(t, h):
        gi = gi_ref[t]            # (Bp, 3Hp) precomputed input projection
        gh = jnp.dot(h, whh, preferred_element_type=jnp.float32) + bhh
        # lane-aligned gate slices (hp is a multiple of 128)
        i_r, i_i, i_n = gi[:, :hp], gi[:, hp:2 * hp], gi[:, 2 * hp:]
        h_r, h_i, h_n = gh[:, :hp], gh[:, hp:2 * hp], gh[:, 2 * hp:]
        r = jax.nn.sigmoid(i_r + h_r)
        z = jax.nn.sigmoid(i_i + h_i)
        n = jnp.tanh(i_n + r * h_n)
        hy = n + z * (h - n)      # == (1-z)*n + z*h  (PyTorch GRUCell update)
        out_ref[t] = hy           # dense (Bp, Hp) store
        return hy

    h_final = lax.fori_loop(0, t_blk, step, h_scratch[...], unroll=True)
    h_scratch[...] = h_final


def gru_recurrence(gi, h0, w_hh, b_hh, *, hp, t_blk):
    """gi: (T_pad, Bp, 3Hp); h0: (Bp, Hp); w_hh: (Hp, 3Hp); b_hh: (1, 3Hp)."""
    t_pad, bp, g = gi.shape
    n_chunks = t_pad // t_blk
    kernel = functools.partial(_gru_recurrent_kernel, hp=hp, t_blk=t_blk)

    return pl.pallas_call(
        kernel,
        out_shape=jax.ShapeDtypeStruct((t_pad, bp, hp), jnp.float32),
        grid_spec=pltpu.PrefetchScalarGridSpec(
            num_scalar_prefetch=0,
            grid=(n_chunks,),
            in_specs=[
                pl.BlockSpec((t_blk, bp, g), lambda c: (c, 0, 0)),   # gi chunk
                pl.BlockSpec((bp, hp), lambda c: (0, 0)),            # h0
                pl.BlockSpec((hp, g), lambda c: (0, 0)),             # W_hh
                pl.BlockSpec((1, g), lambda c: (0, 0)),              # b_hh
            ],
            out_specs=pl.BlockSpec((t_blk, bp, hp), lambda c: (c, 0, 0)),
            scratch_shapes=[pltpu.VMEM((bp, hp), jnp.float32)],      # carried h
        ),
        compiler_params=pltpu.CompilerParams(
            dimension_semantics=("arbitrary",),   # time is sequential
        ),
    )(gi, h0, w_hh, b_hh)


# ----------------------------------------------------------------------------
# Padding helpers (gate-major layout so each gate sits on a lane boundary)
# ----------------------------------------------------------------------------
def _pad_gru_params(w, b, in_dim_pad, h, hp):
    """w: (in, 3H), b: (1, 3H) -> (in_dim_pad, 3Hp), (1, 3Hp), zero padded."""
    in_dim = w.shape[0]
    w3 = w.reshape(in_dim, 3, h)
    w3 = jnp.pad(w3, ((0, in_dim_pad - in_dim), (0, 0), (0, hp - h)))
    b3 = b.reshape(1, 3, h)
    b3 = jnp.pad(b3, ((0, 0), (0, 0), (0, hp - h)))
    return w3.reshape(in_dim_pad, 3 * hp), b3.reshape(1, 3 * hp)


# ----------------------------------------------------------------------------
# StackedGRU forward (unidirectional, return_all_hidden=False)
# ----------------------------------------------------------------------------
def stacked_gru_forward(inputs, hidden, params, *, t_blk=16,
                        lane_align=128, sublane_align=8):
    """inputs: (T, B, D); hidden: (num_layers, B, H); params[l] = (w_ih, b_ih,
    w_hh, b_hh) with Linear weights stored transposed as (in, 3H).
    Returns (output (T, B, H) of last layer, last_hidden (num_layers, B, H))."""
    T, B, D = inputs.shape
    num_layers, _, H = hidden.shape

    hp = _round_up(H, lane_align)
    bp = _round_up(B, sublane_align)
    t_blk_eff = min(t_blk, T)
    t_pad = _round_up(T, t_blk_eff)

    # padded, time-major input; padded lanes / rows / steps are zero.
    layer_in = jnp.pad(inputs, ((0, t_pad - T), (0, bp - B), (0, 0)))

    last_hiddens = []
    for l in range(num_layers):
        w_ih, b_ih, w_hh, b_hh = params[l]
        in_dim_pad = layer_in.shape[-1]          # D for layer 0, Hp afterwards
        w_ih_p, b_ih_p = _pad_gru_params(w_ih, b_ih, in_dim_pad, H, hp)
        w_hh_p, b_hh_p = _pad_gru_params(w_hh, b_hh, hp, H, hp)
        h0_p = jnp.pad(hidden[l], ((0, bp - B), (0, hp - H)))

        # (1) big non-recurrent GEMM for all timesteps at once
        gi = input_projection(layer_in, w_ih_p, b_ih_p, m_blk=bp * t_blk_eff)
        # (2) serial recurrence, chunked over time
        out = gru_recurrence(gi, h0_p, w_hh_p, b_hh_p, hp=hp, t_blk=t_blk_eff)

        last_hiddens.append(out[T - 1, :B, :H])
        layer_in = out                            # stay padded between layers

    output = layer_in[:T, :B, :H]
    last_hidden = jnp.stack(last_hiddens, axis=0)
    return output, last_hidden


# ----------------------------------------------------------------------------
# Parameter init + pure-JAX reference (unpadded) for checking
# ----------------------------------------------------------------------------
def init_params(key, input_size, hidden_size, num_layers):
    params = []
    in_size = input_size
    for _ in range(num_layers):
        key, k1, k2, k3, k4 = jax.random.split(key, 5)
        s_ih = 1.0 / jnp.sqrt(in_size)
        s_hh = 1.0 / jnp.sqrt(hidden_size)
        w_ih = jax.random.uniform(k1, (in_size, 3 * hidden_size),
                                  minval=-s_ih, maxval=s_ih, dtype=jnp.float32)
        b_ih = jax.random.uniform(k2, (1, 3 * hidden_size),
                                  minval=-s_ih, maxval=s_ih, dtype=jnp.float32)
        w_hh = jax.random.uniform(k3, (hidden_size, 3 * hidden_size),
                                  minval=-s_hh, maxval=s_hh, dtype=jnp.float32)
        b_hh = jax.random.uniform(k4, (1, 3 * hidden_size),
                                  minval=-s_hh, maxval=s_hh, dtype=jnp.float32)
        params.append((w_ih, b_ih, w_hh, b_hh))
        in_size = hidden_size
    return params


def reference_forward(inputs, hidden, params):
    T = inputs.shape[0]
    H = hidden.shape[-1]
    layer_in = inputs
    last_hiddens = []
    for l, (w_ih, b_ih, w_hh, b_hh) in enumerate(params):
        h = hidden[l]
        outs = []
        for t in range(T):
            gi = layer_in[t] @ w_ih + b_ih
            gh = h @ w_hh + b_hh
            i_r, i_i, i_n = gi[:, :H], gi[:, H:2 * H], gi[:, 2 * H:]
            h_r, h_i, h_n = gh[:, :H], gh[:, H:2 * H], gh[:, 2 * H:]
            r = jax.nn.sigmoid(i_r + h_r)
            z = jax.nn.sigmoid(i_i + h_i)
            n = jnp.tanh(i_n + r * h_n)
            h = n + z * (h - n)
            outs.append(h)
        layer_in = jnp.stack(outs, axis=0)
        last_hiddens.append(h)
    return layer_in, jnp.stack(last_hiddens, axis=0)


if __name__ == "__main__":
    T, B, D, H, NUM_LAYERS = 8, 4, 16, 32, 2

    key = jax.random.PRNGKey(0)
    key, kx, kh, kp = jax.random.split(key, 4)

    inputs = jax.random.normal(kx, (T, B, D), dtype=jnp.float32)
    hidden = jax.random.normal(kh, (NUM_LAYERS, B, H), dtype=jnp.float32)
    params = init_params(kp, D, H, NUM_LAYERS)

    fwd = jax.jit(stacked_gru_forward)
    output, last_hidden = fwd(inputs, hidden, params)
    output = jax.block_until_ready(output)
    last_hidden = jax.block_until_ready(last_hidden)

    ref_out, ref_hid = reference_forward(inputs, hidden, params)
    assert output.shape == (T, B, H)
    assert last_hidden.shape == (NUM_LAYERS, B, H)
    assert jnp.allclose(output, ref_out, atol=1e-4, rtol=1e-4)
    assert jnp.allclose(last_hidden, ref_hid, atol=1e-4, rtol=1e-4)

    print("KERNEL_OK")
</pallas_src>

<mosaic_0001>
module attributes {stable_mosaic.version = 11 : i64} {
  func.func @_proj_kernel(%arg0: i32, %arg1: memref<64x16xf32, #tpu.memory_space<vmem>>, %arg2: memref<16x384xf32, #tpu.memory_space<vmem>>, %arg3: memref<1x384xf32, #tpu.memory_space<vmem>>, %arg4: memref<64x384xf32, #tpu.memory_space<vmem>>) attributes {dimension_semantics = [#tpu.dimension_semantics<parallel>], iteration_bounds = array<i64: 1>, scalar_prefetch = 0 : i64, scratch_operands = 0 : i64, tpu.core_type = #tpu.core_type<tc>, window_params = [{transform_indices = @transform_0, window_bounds = array<i64: 64, 16>}, {pipeline_mode = #tpu.pipeline_mode<synchronous>, transform_indices = @transform_1, window_bounds = array<i64: 16, 384>}, {pipeline_mode = #tpu.pipeline_mode<synchronous>, transform_indices = @transform_2, window_bounds = array<i64: 1, 384>}, {transform_indices = @transform_3, window_bounds = array<i64: 64, 384>}]} {
    %c0 = arith.constant 0 : index
    %c0_0 = arith.constant 0 : index
    %0 = vector.load %arg1[%c0, %c0_0] : memref<64x16xf32, #tpu.memory_space<vmem>>, vector<64x16xf32>
    %c0_1 = arith.constant 0 : index
    %c0_2 = arith.constant 0 : index
    %1 = vector.load %arg2[%c0_1, %c0_2] : memref<16x384xf32, #tpu.memory_space<vmem>>, vector<16x384xf32>
    %cst = arith.constant dense<0.000000e+00> : vector<64x384xf32>
    %2 = tpu.matmul %0, %1, %cst {dimension_numbers = #tpu.dot_dimension_numbers<[1], [0], [0], [1], [0, 0, 1, 1], [], []>} : vector<64x16xf32>, vector<16x384xf32>, vector<64x384xf32> -> vector<64x384xf32>
    %c0_3 = arith.constant 0 : index
    %c0_4 = arith.constant 0 : index
    %3 = vector.load %arg3[%c0_3, %c0_4] : memref<1x384xf32, #tpu.memory_space<vmem>>, vector<1x384xf32>
    %4 = vector.broadcast %3 : vector<1x384xf32> to vector<64x384xf32>
    %5 = arith.addf %2, %4 : vector<64x384xf32>
    %c0_5 = arith.constant 0 : index
    %c0_6 = arith.constant 0 : index
    %6 = vector.load %arg4[%c0_5, %c0_6] : memref<64x384xf32, #tpu.memory_space<vmem>>, vector<64x384xf32>
    tpu.vector_store %arg4[%c0_5, %c0_6], %5 {strides = array<i32>} : memref<64x384xf32, #tpu.memory_space<vmem>>, vector<64x384xf32>,
    return
  }
  func.func @transform_0(%arg0: i32) -> (i32, i32) {
    %c0_i32 = arith.constant 0 : i32
    %c0_i32_0 = arith.constant 0 : i32
    return %arg0, %c0_i32 : i32, i32
  }
  func.func @transform_1(%arg0: i32) -> (i32, i32) {
    %c0_i32 = arith.constant 0 : i32
    %c0_i32_0 = arith.constant 0 : i32
    %c0_i32_1 = arith.constant 0 : i32
    return %c0_i32, %c0_i32_0 : i32, i32
  }
  func.func @transform_2(%arg0: i32) -> (i32, i32) {
    %c0_i32 = arith.constant 0 : i32
    %c0_i32_0 = arith.constant 0 : i32
    %c0_i32_1 = arith.constant 0 : i32
    return %c0_i32, %c0_i32_0 : i32, i32
  }
  func.func @transform_3(%arg0: i32) -> (i32, i32) {
    %c0_i32 = arith.constant 0 : i32
    %c0_i32_0 = arith.constant 0 : i32
    return %arg0, %c0_i32 : i32, i32
  }
}

module attributes {stable_mosaic.version = 11 : i64} {
  func.func @_proj_kernel(%arg0: i32, %arg1: memref<64x128xf32, #tpu.memory_space<vmem>>, %arg2: memref<128x384xf32, #tpu.memory_space<vmem>>, %arg3: memref<1x384xf32, #tpu.memory_space<vmem>>, %arg4: memref<64x384xf32, #tpu.memory_space<vmem>>) attributes {dimension_semantics = [#tpu.dimension_semantics<parallel>], iteration_bounds = array<i64: 1>, scalar_prefetch = 0 : i64, scratch_operands = 0 : i64, tpu.core_type = #tpu.core_type<tc>, window_params = [{transform_indices = @transform_0, window_bounds = array<i64: 64, 128>}, {pipeline_mode = #tpu.pipeline_mode<synchronous>, transform_indices = @transform_1, window_bounds = array<i64: 128, 384>}, {pipeline_mode = #tpu.pipeline_mode<synchronous>, transform_indices = @transform_2, window_bounds = array<i64: 1, 384>}, {transform_indices = @transform_3, window_bounds = array<i64: 64, 384>}]} {
    %c0 = arith.constant 0 : index
    %c0_0 = arith.constant 0 : index
    %0 = vector.load %arg1[%c0, %c0_0] : memref<64x128xf32, #tpu.memory_space<vmem>>, vector<64x128xf32>
    %c0_1 = arith.constant 0 : index
    %c0_2 = arith.constant 0 : index
    %1 = vector.load %arg2[%c0_1, %c0_2] : memref<128x384xf32, #tpu.memory_space<vmem>>, vector<128x384xf32>
    %cst = arith.constant dense<0.000000e+00> : vector<64x384xf32>
    %2 = tpu.matmul %0, %1, %cst {dimension_numbers = #tpu.dot_dimension_numbers<[1], [0], [0], [1], [0, 0, 1, 1], [], []>} : vector<64x128xf32>, vector<128x384xf32>, vector<64x384xf32> -> vector<64x384xf32>
    %c0_3 = arith.constant 0 : index
    %c0_4 = arith.constant 0 : index
    %3 = vector.load %arg3[%c0_3, %c0_4] : memref<1x384xf32, #tpu.memory_space<vmem>>, vector<1x384xf32>
    %4 = vector.broadcast %3 : vector<1x384xf32> to vector<64x384xf32>
    %5 = arith.addf %2, %4 : vector<64x384xf32>
    %c0_5 = arith.constant 0 : index
    %c0_6 = arith.constant 0 : index
    %6 = vector.load %arg4[%c0_5, %c0_6] : memref<64x384xf32, #tpu.memory_space<vmem>>, vector<64x384xf32>
    tpu.vector_store %arg4[%c0_5, %c0_6], %5 {strides = array<i32>} : memref<64x384xf32, #tpu.memory_space<vmem>>, vector<64x384xf32>,
    return
  }
  func.func @transform_0(%arg0: i32) -> (i32, i32) {
    %c0_i32 = arith.constant 0 : i32
    %c0_i32_0 = arith.constant 0 : i32
    return %arg0, %c0_i32 : i32, i32
  }
  func.func @transform_1(%arg0: i32) -> (i32, i32) {
    %c0_i32 = arith.constant 0 : i32
    %c0_i32_0 = arith.constant 0 : i32
    %c0_i32_1 = arith.constant 0 : i32
    return %c0_i32, %c0_i32_0 : i32, i32
  }
  func.func @transform_2(%arg0: i32) -> (i32, i32) {
    %c0_i32 = arith.constant 0 : i32
    %c0_i32_0 = arith.constant 0 : i32
    %c0_i32_1 = arith.constant 0 : i32
    return %c0_i32, %c0_i32_0 : i32, i32
  }
  func.func @transform_3(%arg0: i32) -> (i32, i32) {
    %c0_i32 = arith.constant 0 : i32
    %c0_i32_0 = arith.constant 0 : i32
    return %arg0, %c0_i32 : i32, i32
  }
}

module attributes {stable_mosaic.version = 11 : i64} {
  func.func @_gru_recurrent_kernel(%arg0: i32, %arg1: memref<8x8x384xf32, #tpu.memory_space<vmem>>, %arg2: memref<8x128xf32, #tpu.memory_space<vmem>>, %arg3: memref<128x384xf32, #tpu.memory_space<vmem>>, %arg4: memref<1x384xf32, #tpu.memory_space<vmem>>, %arg5: memref<8x8x128xf32, #tpu.memory_space<vmem>>, %arg6: memref<8x128xf32, #tpu.memory_space<vmem>>) attributes {dimension_semantics = [#tpu.dimension_semantics<arbitrary>], iteration_bounds = array<i64: 1>, scalar_prefetch = 0 : i64, scratch_operands = 1 : i64, tpu.core_type = #tpu.core_type<tc>, window_params = [{transform_indices = @transform_0, window_bounds = array<i64: 8, 8, 384>}, {pipeline_mode = #tpu.pipeline_mode<synchronous>, transform_indices = @transform_1, window_bounds = array<i64: 8, 128>}, {pipeline_mode = #tpu.pipeline_mode<synchronous>, transform_indices = @transform_2, window_bounds = array<i64: 128, 384>}, {pipeline_mode = #tpu.pipeline_mode<synchronous>, transform_indices = @transform_3, window_bounds = array<i64: 1, 384>}, {transform_indices = @transform_4, window_bounds = array<i64: 8, 8, 128>}]} {
    %c0_i32 = arith.constant 0 : i32
    %0 = arith.cmpi eq, %arg0, %c0_i32 : i32
    %1 = arith.extui %0 : i1 to i32
    %c0_i32_0 = arith.constant 0 : i32
    %2 = arith.cmpi ne, %1, %c0_i32_0 : i32
    scf.if %2 {
      %c0_64 = arith.constant 0 : index
      %c0_65 = arith.constant 0 : index
      %279 = vector.load %arg2[%c0_64, %c0_65] : memref<8x128xf32, #tpu.memory_space<vmem>>, vector<8x128xf32>
      %c0_66 = arith.constant 0 : index
      %c0_67 = arith.constant 0 : index
      %280 = vector.load %arg6[%c0_66, %c0_67] : memref<8x128xf32, #tpu.memory_space<vmem>>, vector<8x128xf32>
      tpu.vector_store %arg6[%c0_66, %c0_67], %279 {strides = array<i32>} : memref<8x128xf32, #tpu.memory_space<vmem>>, vector<8x128xf32>,
    } else {
    }
    %c0 = arith.constant 0 : index
    %c0_1 = arith.constant 0 : index
    %3 = vector.load %arg3[%c0, %c0_1] : memref<128x384xf32, #tpu.memory_space<vmem>>, vector<128x384xf32>
    %c0_2 = arith.constant 0 : index
    %c0_3 = arith.constant 0 : index
    %4 = vector.load %arg4[%c0_2, %c0_3] : memref<1x384xf32, #tpu.memory_space<vmem>>, vector<1x384xf32>
    %c0_4 = arith.constant 0 : index
    %c0_5 = arith.constant 0 : index
    %5 = vector.load %arg6[%c0_4, %c0_5] : memref<8x128xf32, #tpu.memory_space<vmem>>, vector<8x128xf32>
    %c0_i32_6 = arith.constant 0 : i32
    %6 = arith.index_cast %c0_i32_6 : i32 to index
    %c0_7 = arith.constant 0 : index
    %c0_8 = arith.constant 0 : index
    %7 = vector.load %arg1[%6, %c0_7, %c0_8] : memref<8x8x384xf32, #tpu.memory_space<vmem>>, vector<1x8x384xf32>
    %8 = vector.shape_cast %7 : vector<1x8x384xf32> to vector<8x384xf32>
    %cst = arith.constant dense<0.000000e+00> : vector<8x384xf32>
    %9 = tpu.matmul %5, %3, %cst {dimension_numbers = #tpu.dot_dimension_numbers<[1], [0], [0], [1], [0, 0, 1, 1], [], []>} : vector<8x128xf32>, vector<128x384xf32>, vector<8x384xf32> -> vector<8x384xf32>
    %10 = vector.broadcast %4 : vector<1x384xf32> to vector<8x384xf32>
    %11 = arith.addf %9, %10 : vector<8x384xf32>
    %12 = vector.extract_strided_slice %8 {offsets = [0, 0], sizes = [8, 128], strides = [1, 1]} : vector<8x384xf32> to vector<8x128xf32>
    %13 = vector.extract_strided_slice %8 {offsets = [0, 128], sizes = [8, 128], strides = [1, 1]} : vector<8x384xf32> to vector<8x128xf32>
    %14 = vector.extract_strided_slice %8 {offsets = [0, 256], sizes = [8, 128], strides = [1, 1]} : vector<8x384xf32> to vector<8x128xf32>
    %15 = vector.extract_strided_slice %11 {offsets = [0, 0], sizes = [8, 128], strides = [1, 1]} : vector<8x384xf32> to vector<8x128xf32>
    %16 = vector.extract_strided_slice %11 {offsets = [0, 128], sizes = [8, 128], strides = [1, 1]} : vector<8x384xf32> to vector<8x128xf32>
    %17 = vector.extract_strided_slice %11 {offsets = [0, 256], sizes = [8, 128], strides = [1, 1]} : vector<8x384xf32> to vector<8x128xf32>
    %18 = arith.addf %12, %15 : vector<8x128xf32>
    %19 = arith.negf %18 : vector<8x128xf32>
    %20 = math.exp %19 : vector<8x128xf32>
    %cst_9 = arith.constant 1.000000e+00 : f32
    %21 = vector.broadcast %cst_9 : f32 to vector<8x128xf32>
    %22 = arith.addf %21, %20 : vector<8x128xf32>
    %23 = arith.divf %21, %22 : vector<8x128xf32>
    %24 = arith.addf %13, %16 : vector<8x128xf32>
    %25 = arith.negf %24 : vector<8x128xf32>
    %26 = math.exp %25 : vector<8x128xf32>
    %cst_10 = arith.constant 1.000000e+00 : f32
    %27 = vector.broadcast %cst_10 : f32 to vector<8x128xf32>
    %28 = arith.addf %27, %26 : vector<8x128xf32>
    %29 = arith.divf %27, %28 : vector<8x128xf32>
    %30 = arith.mulf %23, %17 : vector<8x128xf32>
    %31 = arith.addf %14, %30 : vector<8x128xf32>
    %32 = math.tanh %31 : vector<8x128xf32>
    %33 = arith.subf %5, %32 : vector<8x128xf32>
    %34 = arith.mulf %29, %33 : vector<8x128xf32>
    %35 = arith.addf %32, %34 : vector<8x128xf32>
    %36 = arith.index_cast %c0_i32_6 : i32 to index
    %c0_11 = arith.constant 0 : index
    %c0_12 = arith.constant 0 : index
    %37 = vector.load %arg5[%36, %c0_11, %c0_12] : memref<8x8x128xf32, #tpu.memory_space<vmem>>, vector<1x8x128xf32>
    %38 = vector.shape_cast %37 : vector<1x8x128xf32> to vector<8x128xf32>
    %39 = vector.shape_cast %35 : vector<8x128xf32> to vector<1x8x128xf32>
    tpu.vector_store %arg5[%36, %c0_11, %c0_12], %39 {strides = array<i32>} : memref<8x8x128xf32, #tpu.memory_space<vmem>>, vector<1x8x128xf32>,
    %c1_i32 = arith.constant 1 : i32
    %40 = arith.index_cast %c1_i32 : i32 to index
    %c0_13 = arith.constant 0 : index
    %c0_14 = arith.constant 0 : index
    %41 = vector.load %arg1[%40, %c0_13, %c0_14] : memref<8x8x384xf32, #tpu.memory_space<vmem>>, vector<1x8x384xf32>
    %42 = vector.shape_cast %41 : vector<1x8x384xf32> to vector<8x384xf32>
    %cst_15 = arith.constant dense<0.000000e+00> : vector<8x384xf32>
    %43 = tpu.matmul %35, %3, %cst_15 {dimension_numbers = #tpu.dot_dimension_numbers<[1], [0], [0], [1], [0, 0, 1, 1], [], []>} : vector<8x128xf32>, vector<128x384xf32>, vector<8x384xf32> -> vector<8x384xf32>
    %44 = vector.broadcast %4 : vector<1x384xf32> to vector<8x384xf32>
    %45 = arith.addf %43, %44 : vector<8x384xf32>
    %46 = vector.extract_strided_slice %42 {offsets = [0, 0], sizes = [8, 128], strides = [1, 1]} : vector<8x384xf32> to vector<8x128xf32>
    %47 = vector.extract_strided_slice %42 {offsets = [0, 128], sizes = [8, 128], strides = [1, 1]} : vector<8x384xf32> to vector<8x128xf32>
    %48 = vector.extract_strided_slice %42 {offsets = [0, 256], sizes = [8, 128], strides = [1, 1]} : vector<8x384xf32> to vector<8x128xf32>
    %49 = vector.extract_strided_slice %45 {offsets = [0, 0], sizes = [8, 128], strides = [1, 1]} : vector<8x384xf32> to vector<8x128xf32>
    %50 = vector.extract_strided_slice %45 {offsets = [0, 128], sizes = [8, 128], strides = [1, 1]} : vector<8x384xf32> to vector<8x128xf32>
    %51 = vector.extract_strided_slice %45 {offsets = [0, 256], sizes = [8, 128], strides = [1, 1]} : vector<8x384xf32> to vector<8x128xf32>
    %52 = arith.addf %46, %49 : vector<8x128xf32>
    %53 = arith.negf %52 : vector<8x128xf32>
    %54 = math.exp %53 : vector<8x128xf32>
    %cst_16 = arith.constant 1.000000e+00 : f32
    %55 = vector.broadcast %cst_16 : f32 to vector<8x128xf32>
    %56 = arith.addf %55, %54 : vector<8x128xf32>
    %57 = arith.divf %55, %56 : vector<8x128xf32>
    %58 = arith.addf %47, %50 : vector<8x128xf32>
    %59 = arith.negf %58 : vector<8x128xf32>
    %60 = math.exp %59 : vector<8x128xf32>
    %cst_17 = arith.constant 1.000000e+00 : f32
    %61 = vector.broadcast %cst_17 : f32 to vector<8x128xf32>
    %62 = arith.addf %61, %60 : vector<8x128xf32>
    %63 = arith.divf %61, %62 : vector<8x128xf32>
    %64 = arith.mulf %57, %51 : vector<8x128xf32>
    %65 = arith.addf %48, %64 : vector<8x128xf32>
    %66 = math.tanh %65 : vector<8x128xf32>
    %67 = arith.subf %35, %66 : vector<8x128xf32>
    %68 = arith.mulf %63, %67 : vector<8x128xf32>
    %69 = arith.addf %66, %68 : vector<8x128xf32>
    %70 = arith.index_cast %c1_i32 : i32 to index
    %c0_18 = arith.constant 0 : index
    %c0_19 = arith.constant 0 : index
    %71 = vector.load %arg5[%70, %c0_18, %c0_19] : memref<8x8x128xf32, #tpu.memory_space<vmem>>, vector<1x8x128xf32>
    %72 = vector.shape_cast %71 : vector<1x8x128xf32> to vector<8x128xf32>
    %73 = vector.shape_cast %69 : vector<8x128xf32> to vector<1x8x128xf32>
    tpu.vector_store %arg5[%70, %c0_18, %c0_19], %73 {strides = array<i32>} : memref<8x8x128xf32, #tpu.memory_space<vmem>>, vector<1x8x128xf32>,
    %c2_i32 = arith.constant 2 : i32
    %74 = arith.index_cast %c2_i32 : i32 to index
    %c0_20 = arith.constant 0 : index
    %c0_21 = arith.constant 0 : index
    %75 = vector.load %arg1[%74, %c0_20, %c0_21] : memref<8x8x384xf32, #tpu.memory_space<vmem>>, vector<1x8x384xf32>
    %76 = vector.shape_cast %75 : vector<1x8x384xf32> to vector<8x384xf32>
    %cst_22 = arith.constant dense<0.000000e+00> : vector<8x384xf32>
    %77 = tpu.matmul %69, %3, %cst_22 {dimension_numbers = #tpu.dot_dimension_numbers<[1], [0], [0], [1], [0, 0, 1, 1], [], []>} : vector<8x128xf32>, vector<128x384xf32>, vector<8x384xf32> -> vector<8x384xf32>
    %78 = vector.broadcast %4 : vector<1x384xf32> to vector<8x384xf32>
    %79 = arith.addf %77, %78 : vector<8x384xf32>
    %80 = vector.extract_strided_slice %76 {offsets = [0, 0], sizes = [8, 128], strides = [1, 1]} : vector<8x384xf32> to vector<8x128xf32>
    %81 = vector.extract_strided_slice %76 {offsets = [0, 128], sizes = [8, 128], strides = [1, 1]} : vector<8x384xf32> to vector<8x128xf32>
    %82 = vector.extract_strided_slice %76 {offsets = [0, 256], sizes = [8, 128], strides = [1, 1]} : vector<8x384xf32> to vector<8x128xf32>
    %83 = vector.extract_strided_slice %79 {offsets = [0, 0], sizes = [8, 128], strides = [1, 1]} : vector<8x384xf32> to vector<8x128xf32>
    %84 = vector.extract_strided_slice %79 {offsets = [0, 128], sizes = [8, 128], strides = [1, 1]} : vector<8x384xf32> to vector<8x128xf32>
    %85 = vector.extract_strided_slice %79 {offsets = [0, 256], sizes = [8, 128], strides = [1, 1]} : vector<8x384xf32> to vector<8x128xf32>
    %86 = arith.addf %80, %83 : vector<8x128xf32>
    %87 = arith.negf %86 : vector<8x128xf32>
    %88 = math.exp %87 : vector<8x128xf32>
    %cst_23 = arith.constant 1.000000e+00 : f32
    %89 = vector.broadcast %cst_23 : f32 to vector<8x128xf32>
    %90 = arith.addf %89, %88 : vector<8x128xf32>
    %91 = arith.divf %89, %90 : vector<8x128xf32>
    %92 = arith.addf %81, %84 : vector<8x128xf32>
    %93 = arith.negf %92 : vector<8x128xf32>
    %94 = math.exp %93 : vector<8x128xf32>
    %cst_24 = arith.constant 1.000000e+00 : f32
    %95 = vector.broadcast %cst_24 : f32 to vector<8x128xf32>
    %96 = arith.addf %95, %94 : vector<8x128xf32>
    %97 = arith.divf %95, %96 : vector<8x128xf32>
    %98 = arith.mulf %91, %85 : vector<8x128xf32>
    %99 = arith.addf %82, %98 : vector<8x128xf32>
    %100 = math.tanh %99 : vector<8x128xf32>
    %101 = arith.subf %69, %100 : vector<8x128xf32>
    %102 = arith.mulf %97, %101 : vector<8x128xf32>
    %103 = arith.addf %100, %102 : vector<8x128xf32>
    %104 = arith.index_cast %c2_i32 : i32 to index
    %c0_25 = arith.constant 0 : index
    %c0_26 = arith.constant 0 : index
    %105 = vector.load %arg5[%104, %c0_25, %c0_26] : memref<8x8x128xf32, #tpu.memory_space<vmem>>, vector<1x8x128xf32>
    %106 = vector.shape_cast %105 : vector<1x8x128xf32> to vector<8x128xf32>
    %107 = vector.shape_cast %103 : vector<8x128xf32> to vector<1x8x128xf32>
    tpu.vector_store %arg5[%104, %c0_25, %c0_26], %107 {strides = array<i32>} : memref<8x8x128xf32, #tpu.memory_space<vmem>>, vector<1x8x128xf32>,
    %c3_i32 = arith.constant 3 : i32
    %108 = arith.index_cast %c3_i32 : i32 to index
    %c0_27 = arith.constant 0 : index
    %c0_28 = arith.constant 0 : index
    %109 = vector.load %arg1[%108, %c0_27, %c0_28] : memref<8x8x384xf32, #tpu.memory_space<vmem>>, vector<1x8x384xf32>
    %110 = vector.shape_cast %109 : vector<1x8x384xf32> to vector<8x384xf32>
    %cst_29 = arith.constant dense<0.000000e+00> : vector<8x384xf32>
    %111 = tpu.matmul %103, %3, %cst_29 {dimension_numbers = #tpu.dot_dimension_numbers<[1], [0], [0], [1], [0, 0, 1, 1], [], []>} : vector<8x128xf32>, vector<128x384xf32>, vector<8x384xf32> -> vector<8x384xf32>
    %112 = vector.broadcast %4 : vector<1x384xf32> to vector<8x384xf32>
    %113 = arith.addf %111, %112 : vector<8x384xf32>
    %114 = vector.extract_strided_slice %110 {offsets = [0, 0], sizes = [8, 128], strides = [1, 1]} : vector<8x384xf32> to vector<8x128xf32>
    %115 = vector.extract_strided_slice %110 {offsets = [0, 128], sizes = [8, 128], strides = [1, 1]} : vector<8x384xf32> to vector<8x128xf32>
    %116 = vector.extract_strided_slice %110 {offsets = [0, 256], sizes = [8, 128], strides = [1, 1]} : vector<8x384xf32> to vector<8x128xf32>
    %117 = vector.extract_strided_slice %113 {offsets = [0, 0], sizes = [8, 128], strides = [1, 1]} : vector<8x384xf32> to vector<8x128xf32>
    %118 = vector.extract_strided_slice %113 {offsets = [0, 128], sizes = [8, 128], strides = [1, 1]} : vector<8x384xf32> to vector<8x128xf32>
    %119 = vector.extract_strided_slice %113 {offsets = [0, 256], sizes = [8, 128], strides = [1, 1]} : vector<8x384xf32> to vector<8x128xf32>
    %120 = arith.addf %114, %117 : vector<8x128xf32>
    %121 = arith.negf %120 : vector<8x128xf32>
    %122 = math.exp %121 : vector<8x128xf32>
    %cst_30 = arith.constant 1.000000e+00 : f32
    %123 = vector.broadcast %cst_30 : f32 to vector<8x128xf32>
    %124 = arith.addf %123, %122 : vector<8x128xf32>
    %125 = arith.divf %123, %124 : vector<8x128xf32>
    %126 = arith.addf %115, %118 : vector<8x128xf32>
    %127 = arith.negf %126 : vector<8x128xf32>
    %128 = math.exp %127 : vector<8x128xf32>
    %cst_31 = arith.constant 1.000000e+00 : f32
    %129 = vector.broadcast %cst_31 : f32 to vector<8x128xf32>
    %130 = arith.addf %129, %128 : vector<8x128xf32>
    %131 = arith.divf %129, %130 : vector<8x128xf32>
    %132 = arith.mulf %125, %119 : vector<8x128xf32>
    %133 = arith.addf %116, %132 : vector<8x128xf32>
    %134 = math.tanh %133 : vector<8x128xf32>
    %135 = arith.subf %103, %134 : vector<8x128xf32>
    %136 = arith.mulf %131, %135 : vector<8x128xf32>
    %137 = arith.addf %134, %136 : vector<8x128xf32>
    %138 = arith.index_cast %c3_i32 : i32 to index
    %c0_32 = arith.constant 0 : index
    %c0_33 = arith.constant 0 : index
    %139 = vector.load %arg5[%138, %c0_32, %c0_33] : memref<8x8x128xf32, #tpu.memory_space<vmem>>, vector<1x8x128xf32>
    %140 = vector.shape_cast %139 : vector<1x8x128xf32> to vector<8x128xf32>
    %141 = vector.shape_cast %137 : vector<8x128xf32> to vector<1x8x128xf32>
    tpu.vector_store %arg5[%138, %c0_32, %c0_33], %141 {strides = array<i32>} : memref<8x8x128xf32, #tpu.memory_space<vmem>>, vector<1x8x128xf32>,
    %c4_i32 = arith.constant 4 : i32
    %142 = arith.index_cast %c4_i32 : i32 to index
    %c0_34 = arith.constant 0 : index
    %c0_35 = arith.constant 0 : index
    %143 = vector.load %arg1[%142, %c0_34, %c0_35] : memref<8x8x384xf32, #tpu.memory_space<vmem>>, vector<1x8x384xf32>
    %144 = vector.shape_cast %143 : vector<1x8x384xf32> to vector<8x384xf32>
    %cst_36 = arith.constant dense<0.000000e+00> : vector<8x384xf32>
    %145 = tpu.matmul %137, %3, %cst_36 {dimension_numbers = #tpu.dot_dimension_numbers<[1], [0], [0], [1], [0, 0, 1, 1], [], []>} : vector<8x128xf32>, vector<128x384xf32>, vector<8x384xf32> -> vector<8x384xf32>
    %146 = vector.broadcast %4 : vector<1x384xf32> to vector<8x384xf32>
    %147 = arith.addf %145, %146 : vector<8x384xf32>
    %148 = vector.extract_strided_slice %144 {offsets = [0, 0], sizes = [8, 128], strides = [1, 1]} : vector<8x384xf32> to vector<8x128xf32>
    %149 = vector.extract_strided_slice %144 {offsets = [0, 128], sizes = [8, 128], strides = [1, 1]} : vector<8x384xf32> to vector<8x128xf32>
    %150 = vector.extract_strided_slice %144 {offsets = [0, 256], sizes = [8, 128], strides = [1, 1]} : vector<8x384xf32> to vector<8x128xf32>
    %151 = vector.extract_strided_slice %147 {offsets = [0, 0], sizes = [8, 128], strides = [1, 1]} : vector<8x384xf32> to vector<8x128xf32>
    %152 = vector.extract_strided_slice %147 {offsets = [0, 128], sizes = [8, 128], strides = [1, 1]} : vector<8x384xf32> to vector<8x128xf32>
    %153 = vector.extract_strided_slice %147 {offsets = [0, 256], sizes = [8, 128], strides = [1, 1]} : vector<8x384xf32> to vector<8x128xf32>
    %154 = arith.addf %148, %151 : vector<8x128xf32>
    %155 = arith.negf %154 : vector<8x128xf32>
    %156 = math.exp %155 : vector<8x128xf32>
    %cst_37 = arith.constant 1.000000e+00 : f32
    %157 = vector.broadcast %cst_37 : f32 to vector<8x128xf32>
    %158 = arith.addf %157, %156 : vector<8x128xf32>
    %159 = arith.divf %157, %158 : vector<8x128xf32>
    %160 = arith.addf %149, %152 : vector<8x128xf32>
    %161 = arith.negf %160 : vector<8x128xf32>
    %162 = math.exp %161 : vector<8x128xf32>
    %cst_38 = arith.constant 1.000000e+00 : f32
    %163 = vector.broadcast %cst_38 : f32 to vector<8x128xf32>
    %164 = arith.addf %163, %162 : vector<8x128xf32>
    %165 = arith.divf %163, %164 : vector<8x128xf32>
    %166 = arith.mulf %159, %153 : vector<8x128xf32>
    %167 = arith.addf %150, %166 : vector<8x128xf32>
    %168 = math.tanh %167 : vector<8x128xf32>
    %169 = arith.subf %137, %168 : vector<8x128xf32>
    %170 = arith.mulf %165, %169 : vector<8x128xf32>
    %171 = arith.addf %168, %170 : vector<8x128xf32>
    %172 = arith.index_cast %c4_i32 : i32 to index
    %c0_39 = arith.constant 0 : index
    %c0_40 = arith.constant 0 : index
    %173 = vector.load %arg5[%172, %c0_39, %c0_40] : memref<8x8x128xf32, #tpu.memory_space<vmem>>, vector<1x8x128xf32>
    %174 = vector.shape_cast %173 : vector<1x8x128xf32> to vector<8x128xf32>
    %175 = vector.shape_cast %171 : vector<8x128xf32> to vector<1x8x128xf32>
    tpu.vector_store %arg5[%172, %c0_39, %c0_40], %175 {strides = array<i32>} : memref<8x8x128xf32, #tpu.memory_space<vmem>>, vector<1x8x128xf32>,
    %c5_i32 = arith.constant 5 : i32
    %176 = arith.index_cast %c5_i32 : i32 to index
    %c0_41 = arith.constant 0 : index
    %c0_42 = arith.constant 0 : index
    %177 = vector.load %arg1[%176, %c0_41, %c0_42] : memref<8x8x384xf32, #tpu.memory_space<vmem>>, vector<1x8x384xf32>
    %178 = vector.shape_cast %177 : vector<1x8x384xf32> to vector<8x384xf32>
    %cst_43 = arith.constant dense<0.000000e+00> : vector<8x384xf32>
    %179 = tpu.matmul %171, %3, %cst_43 {dimension_numbers = #tpu.dot_dimension_numbers<[1], [0], [0], [1], [0, 0, 1, 1], [], []>} : vector<8x128xf32>, vector<128x384xf32>, vector<8x384xf32> -> vector<8x384xf32>
    %180 = vector.broadcast %4 : vector<1x384xf32> to vector<8x384xf32>
    %181 = arith.addf %179, %180 : vector<8x384xf32>
    %182 = vector.extract_strided_slice %178 {offsets = [0, 0], sizes = [8, 128], strides = [1, 1]} : vector<8x384xf32> to vector<8x128xf32>
    %183 = vector.extract_strided_slice %178 {offsets = [0, 128], sizes = [8, 128], strides = [1, 1]} : vector<8x384xf32> to vector<8x128xf32>
    %184 = vector.extract_strided_slice %178 {offsets = [0, 256], sizes = [8, 128], strides = [1, 1]} : vector<8x384xf32> to vector<8x128xf32>
    %185 = vector.extract_strided_slice %181 {offsets = [0, 0], sizes = [8, 128], strides = [1, 1]} : vector<8x384xf32> to vector<8x128xf32>
    %186 = vector.extract_strided_slice %181 {offsets = [0, 128], sizes = [8, 128], strides = [1, 1]} : vector<8x384xf32> to vector<8x128xf32>
    %187 = vector.extract_strided_slice %181 {offsets = [0, 256], sizes = [8, 128], strides = [1, 1]} : vector<8x384xf32> to vector<8x128xf32>
    %188 = arith.addf %182, %185 : vector<8x128xf32>
    %189 = arith.negf %188 : vector<8x128xf32>
    %190 = math.exp %189 : vector<8x128xf32>
    %cst_44 = arith.constant 1.000000e+00 : f32
    %191 = vector.broadcast %cst_44 : f32 to vector<8x128xf32>
    %192 = arith.addf %191, %190 : vector<8x128xf32>
    %193 = arith.divf %191, %192 : vector<8x128xf32>
    %194 = arith.addf %183, %186 : vector<8x128xf32>
    %195 = arith.negf %194 : vector<8x128xf32>
    %196 = math.exp %195 : vector<8x128xf32>
    %cst_45 = arith.constant 1.000000e+00 : f32
    %197 = vector.broadcast %cst_45 : f32 to vector<8x128xf32>
    %198 = arith.addf %197, %196 : vector<8x128xf32>
    %199 = arith.divf %197, %198 : vector<8x128xf32>
    %200 = arith.mulf %193, %187 : vector<8x128xf32>
    %201 = arith.addf %184, %200 : vector<8x128xf32>
    %202 = math.tanh %201 : vector<8x128xf32>
    %203 = arith.subf %171, %202 : vector<8x128xf32>
    %204 = arith.mulf %199, %203 : vector<8x128xf32>
    %205 = arith.addf %202, %204 : vector<8x128xf32>
    %206 = arith.index_cast %c5_i32 : i32 to index
    %c0_46 = arith.constant 0 : index
    %c0_47 = arith.constant 0 : index
    %207 = vector.load %arg5[%206, %c0_46, %c0_47] : memref<8x8x128xf32, #tpu.memory_space<vmem>>, vector<1x8x128xf32>
    %208 = vector.shape_cast %207 : vector<1x8x128xf32> to vector<8x128xf32>
    %209 = vector.shape_cast %205 : vector<8x128xf32> to vector<1x8x128xf32>
    tpu.vector_store %arg5[%206, %c0_46, %c0_47], %209 {strides = array<i32>} : memref<8x8x128xf32, #tpu.memory_space<vmem>>, vector<1x8x128xf32>,
    %c6_i32 = arith.constant 6 : i32
    %210 = arith.index_cast %c6_i32 : i32 to index
    %c0_48 = arith.constant 0 : index
    %c0_49 = arith.constant 0 : index
    %211 = vector.load %arg1[%210, %c0_48, %c0_49] : memref<8x8x384xf32, #tpu.memory_space<vmem>>, vector<1x8x384xf32>
    %212 = vector.shape_cast %211 : vector<1x8x384xf32> to vector<8x384xf32>
    %cst_50 = arith.constant dense<0.000000e+00> : vector<8x384xf32>
    %213 = tpu.matmul %205, %3, %cst_50 {dimension_numbers = #tpu.dot_dimension_numbers<[1], [0], [0], [1], [0, 0, 1, 1], [], []>} : vector<8x128xf32>, vector<128x384xf32>, vector<8x384xf32> -> vector<8x384xf32>
    %214 = vector.broadcast %4 : vector<1x384xf32> to vector<8x384xf32>
    %215 = arith.addf %213, %214 : vector<8x384xf32>
    %216 = vector.extract_strided_slice %212 {offsets = [0, 0], sizes = [8, 128], strides = [1, 1]} : vector<8x384xf32> to vector<8x128xf32>
    %217 = vector.extract_strided_slice %212 {offsets = [0, 128], sizes = [8, 128], strides = [1, 1]} : vector<8x384xf32> to vector<8x128xf32>
    %218 = vector.extract_strided_slice %212 {offsets = [0, 256], sizes = [8, 128], strides = [1, 1]} : vector<8x384xf32> to vector<8x128xf32>
    %219 = vector.extract_strided_slice %215 {offsets = [0, 0], sizes = [8, 128], strides = [1, 1]} : vector<8x384xf32> to vector<8x128xf32>
    %220 = vector.extract_strided_slice %215 {offsets = [0, 128], sizes = [8, 128], strides = [1, 1]} : vector<8x384xf32> to vector<8x128xf32>
    %221 = vector.extract_strided_slice %215 {offsets = [0, 256], sizes = [8, 128], strides = [1, 1]} : vector<8x384xf32> to vector<8x128xf32>
    %222 = arith.addf %216, %219 : vector<8x128xf32>
    %223 = arith.negf %222 : vector<8x128xf32>
    %224 = math.exp %223 : vector<8x128xf32>
    %cst_51 = arith.constant 1.000000e+00 : f32
    %225 = vector.broadcast %cst_51 : f32 to vector<8x128xf32>
    %226 = arith.addf %225, %224 : vector<8x128xf32>
    %227 = arith.divf %225, %226 : vector<8x128xf32>
    %228 = arith.addf %217, %220 : vector<8x128xf32>
    %229 = arith.negf %228 : vector<8x128xf32>
    %230 = math.exp %229 : vector<8x128xf32>
    %cst_52 = arith.constant 1.000000e+00 : f32
    %231 = vector.broadcast %cst_52 : f32 to vector<8x128xf32>
    %232 = arith.addf %231, %230 : vector<8x128xf32>
    %233 = arith.divf %231, %232 : vector<8x128xf32>
    %234 = arith.mulf %227, %221 : vector<8x128xf32>
    %235 = arith.addf %218, %234 : vector<8x128xf32>
    %236 = math.tanh %235 : vector<8x128xf32>
    %237 = arith.subf %205, %236 : vector<8x128xf32>
    %238 = arith.mulf %233, %237 : vector<8x128xf32>
    %239 = arith.addf %236, %238 : vector<8x128xf32>
    %240 = arith.index_cast %c6_i32 : i32 to index
    %c0_53 = arith.constant 0 : index
    %c0_54 = arith.constant 0 : index
    %241 = vector.load %arg5[%240, %c0_53, %c0_54] : memref<8x8x128xf32, #tpu.memory_space<vmem>>, vector<1x8x128xf32>
    %242 = vector.shape_cast %241 : vector<1x8x128xf32> to vector<8x128xf32>
    %243 = vector.shape_cast %239 : vector<8x128xf32> to vector<1x8x128xf32>
    tpu.vector_store %arg5[%240, %c0_53, %c0_54], %243 {strides = array<i32>} : memref<8x8x128xf32, #tpu.memory_space<vmem>>, vector<1x8x128xf32>,
    %c7_i32 = arith.constant 7 : i32
    %244 = arith.index_cast %c7_i32 : i32 to index
    %c0_55 = arith.constant 0 : index
    %c0_56 = arith.constant 0 : index
    %245 = vector.load %arg1[%244, %c0_55, %c0_56] : memref<8x8x384xf32, #tpu.memory_space<vmem>>, vector<1x8x384xf32>
    %246 = vector.shape_cast %245 : vector<1x8x384xf32> to vector<8x384xf32>
    %cst_57 = arith.constant dense<0.000000e+00> : vector<8x384xf32>
    %247 = tpu.matmul %239, %3, %cst_57 {dimension_numbers = #tpu.dot_dimension_numbers<[1], [0], [0], [1], [0, 0, 1, 1], [], []>} : vector<8x128xf32>, vector<128x384xf32>, vector<8x384xf32> -> vector<8x384xf32>
    %248 = vector.broadcast %4 : vector<1x384xf32> to vector<8x384xf32>
    %249 = arith.addf %247, %248 : vector<8x384xf32>
    %250 = vector.extract_strided_slice %246 {offsets = [0, 0], sizes = [8, 128], strides = [1, 1]} : vector<8x384xf32> to vector<8x128xf32>
    %251 = vector.extract_strided_slice %246 {offsets = [0, 128], sizes = [8, 128], strides = [1, 1]} : vector<8x384xf32> to vector<8x128xf32>
    %252 = vector.extract_strided_slice %246 {offsets = [0, 256], sizes = [8, 128], strides = [1, 1]} : vector<8x384xf32> to vector<8x128xf32>
    %253 = vector.extract_strided_slice %249 {offsets = [0, 0], sizes = [8, 128], strides = [1, 1]} : vector<8x384xf32> to vector<8x128xf32>
    %254 = vector.extract_strided_slice %249 {offsets = [0, 128], sizes = [8, 128], strides = [1, 1]} : vector<8x384xf32> to vector<8x128xf32>
    %255 = vector.extract_strided_slice %249 {offsets = [0, 256], sizes = [8, 128], strides = [1, 1]} : vector<8x384xf32> to vector<8x128xf32>
    %256 = arith.addf %250, %253 : vector<8x128xf32>
    %257 = arith.negf %256 : vector<8x128xf32>
    %258 = math.exp %257 : vector<8x128xf32>
    %cst_58 = arith.constant 1.000000e+00 : f32
    %259 = vector.broadcast %cst_58 : f32 to vector<8x128xf32>
    %260 = arith.addf %259, %258 : vector<8x128xf32>
    %261 = arith.divf %259, %260 : vector<8x128xf32>
    %262 = arith.addf %251, %254 : vector<8x128xf32>
    %263 = arith.negf %262 : vector<8x128xf32>
    %264 = math.exp %263 : vector<8x128xf32>
    %cst_59 = arith.constant 1.000000e+00 : f32
    %265 = vector.broadcast %cst_59 : f32 to vector<8x128xf32>
    %266 = arith.addf %265, %264 : vector<8x128xf32>
    %267 = arith.divf %265, %266 : vector<8x128xf32>
    %268 = arith.mulf %261, %255 : vector<8x128xf32>
    %269 = arith.addf %252, %268 : vector<8x128xf32>
    %270 = math.tanh %269 : vector<8x128xf32>
    %271 = arith.subf %239, %270 : vector<8x128xf32>
    %272 = arith.mulf %267, %271 : vector<8x128xf32>
    %273 = arith.addf %270, %272 : vector<8x128xf32>
    %274 = arith.index_cast %c7_i32 : i32 to index
    %c0_60 = arith.constant 0 : index
    %c0_61 = arith.constant 0 : index
    %275 = vector.load %arg5[%274, %c0_60, %c0_61] : memref<8x8x128xf32, #tpu.memory_space<vmem>>, vector<1x8x128xf32>
    %276 = vector.shape_cast %275 : vector<1x8x128xf32> to vector<8x128xf32>
    %277 = vector.shape_cast %273 : vector<8x128xf32> to vector<1x8x128xf32>
    tpu.vector_store %arg5[%274, %c0_60, %c0_61], %277 {strides = array<i32>} : memref<8x8x128xf32, #tpu.memory_space<vmem>>, vector<1x8x128xf32>,
    %c8_i32 = arith.constant 8 : i32
    %c0_62 = arith.constant 0 : index
    %c0_63 = arith.constant 0 : index
    %278 = vector.load %arg6[%c0_62, %c0_63] : memref<8x128xf32, #tpu.memory_space<vmem>>, vector<8x128xf32>
    tpu.vector_store %arg6[%c0_62, %c0_63], %273 {strides = array<i32>} : memref<8x128xf32, #tpu.memory_space<vmem>>, vector<8x128xf32>,
    return
  }
  func.func @transform_0(%arg0: i32) -> (i32, i32, i32) {
    %c0_i32 = arith.constant 0 : i32
    %c0_i32_0 = arith.constant 0 : i32
    %c0_i32_1 = arith.constant 0 : i32
    return %arg0, %c0_i32, %c0_i32_0 : i32, i32, i32
  }
  func.func @transform_1(%arg0: i32) -> (i32, i32) {
    %c0_i32 = arith.constant 0 : i32
    %c0_i32_0 = arith.constant 0 : i32
    %c0_i32_1 = arith.constant 0 : i32
    return %c0_i32, %c0_i32_0 : i32, i32
  }
  func.func @transform_2(%arg0: i32) -> (i32, i32) {
    %c0_i32 = arith.constant 0 : i32
    %c0_i32_0 = arith.constant 0 : i32
    %c0_i32_1 = arith.constant 0 : i32
    return %c0_i32, %c0_i32_0 : i32, i32
  }
  func.func @transform_3(%arg0: i32) -> (i32, i32) {
    %c0_i32 = arith.constant 0 : i32
    %c0_i32_0 = arith.constant 0 : i32
    %c0_i32_1 = arith.constant 0 : i32
    return %c0_i32, %c0_i32_0 : i32, i32
  }
  func.func @transform_4(%arg0: i32) -> (i32, i32, i32) {
    %c0_i32 = arith.constant 0 : i32
    %c0_i32_0 = arith.constant 0 : i32
    %c0_i32_1 = arith.constant 0 : i32
    return %arg0, %c0_i32, %c0_i32_0 : i32, i32, i32
  }
}

</mosaic_0001>

<bundles_post_ra>
// kernel: stacked_gru_forward.4
= control target key start
LH: loop header
LB: loop body
LE: loop exit
PB: predicated region body
PF: predicated region fallthrough
CT: control target
= control target key end

     0   :  { %v369_v3 = vmov 0.0   ;;  %vm45_vm0 = vcmask 130048   ;;  %v30_v18 = vlaneseq  ;;  %s543_s1 = inlined_call_operand.vmem [shape: f32[16,384], index: 1, kind: input, shape index: {}]   ;;  %s544_s0 = inlined_call_operand.vmem [shape: f32[64,16], index: 0, kind: input, shape index: {}]   ;;  %s545_s2 = inlined_call_operand.vmem [shape: f32[1,384], index: 2, kind: input, shape index: {}]   ;;  %s546_s3 = inlined_call_operand.vmem [shape: f32[64,384], index: 3, kind: output, shape index: {}]  }
   0x1   :  { %v23_v0 = vld [vmem:[%s543_s1 + $0x8] sm:$0xff]  ;;  %v26_v1 = vld [vmem:[%s543_s1 + $0x20] sm:$0xff]  ;;  %134 = vmatprep.mubr.f32.mxu0 %v369_v3  ;;  %170 = vmatprep.mubr.f32.mxu1 %v369_v3  ;;  %v25_v5 = vld [vmem:[%s543_s1 + $0x18] sm:$0xff] }
   0x2   :  { %v22_v2 = vld [vmem:[%s543_s1] sm:$0xff]  ;;  %v358_v4 = vpack.c.bf16 %v26_v1, %v23_v0  ;;  %v24_v7 = vld [vmem:[%s543_s1 + $0x10] sm:$0xff]  ;;  %v27_v8 = vld [vmem:[%s543_s1 + $0x28] sm:$0xff]  ;;  %v31_v19 = vshrl.u32 %v30_v18, 7 }
   0x3   :  { %v360_v6 = vpack.c.bf16 %v25_v5, %v22_v2  ;;  %v362_v9 = vpack.c.bf16 %v27_v8, %v24_v7  ;;  %v14_v10 = vld [vmem:[%s544_s0] sm:$0xff]  ;;  %v20_v11 = vld [vmem:[%s544_s0 + $0x30] sm:$0xff]  ;;  %v15_v12 = vld [vmem:[%s544_s0 + $0x8] sm:$0xff] }
   0x4   :  { %359 = vmatprep.subr.bf16.mxu0 %v358_v4  ;;  %366 = vmatprep.subr.bf16.mxu1 %v358_v4  ;;  %v21_v13 = vld [vmem:[%s544_s0 + $0x38] sm:$0xff]  ;;  %v16_v14 = vld [vmem:[%s544_s0 + $0x10] sm:$0xff]  ;;  %v18_v16 = vld [vmem:[%s544_s0 + $0x20] sm:$0xff]  ;;  %v32_v20 = vsub.s32 0, %v31_v19  ;;  %v36_v22 = vsub.s32 1, %v31_v19  ;;  %v40_v31 = vsub.s32 2, %v31_v19 }
   0x5   :  { %361 = vmatpush1.bf16.msra.mxu0 %v360_v6  ;;  %367 = vmatpush1.bf16.msra.mxu1 %v360_v6  ;;  %v17_v15 = vld [vmem:[%s544_s0 + $0x18] sm:$0xff]  ;;  %v19_v17 = vld [vmem:[%s544_s0 + $0x28] sm:$0xff]  ;;  %v28_v21 = vld [vmem:[%s545_s2] sm:$0x7] }
   0x6   :  { %363 = vmatprep.subr.bf16.mxu1 %v362_v9  ;;  %v451_v23 = vrot.slane %v28_v21, %v32_v20  ;;  %v453_v24 = vrot.slane %v28_v21, %v36_v22  ;;  %v41_v40 = vrot.slane %v28_v21, %v40_v31 }
   0x8   :  { %316 = vmatmul.mubr.msk.f32.vlgmr.msra.gmra.mrb[0].mxu0 %vm45_vm0, %v14_v10  ;;  %322 = vmatmul.mubr.msk.f32.vlgmr.msra.gmra.mrb[0].mxu1 %vm45_vm0, %v20_v11 }
   0x9   :  { %365 = vmatpush3.bf16.msra.mxu1 %v362_v9  ;;  %140 = vmatprep.mubr.f32.mxu0 %v369_v3 }
   0xa   :  { %176 = vmatprep.mubr.f32.mxu1 %v369_v3 }
   0xc   :  { %317 = vmatmul.mubr.msk.f32.gmra.mrb[2].mxu0 %vm45_vm0, %v15_v12  ;;  %323 = vmatmul.mubr.msk.f32.gmra.mrb[2].mxu1 %vm45_vm0, %v21_v13 }
   0xd   :  { %146 = vmatprep.mubr.f32.mxu0 %v369_v3  ;;  %346 = vmatprep.mubr.msk.f32.mxu1 %vm45_vm0, %v14_v10 }
  0x10   :  { %318 = vmatmul.mubr.msk.f32.gmra.mrb[4].mxu0 %vm45_vm0, %v16_v14  ;;  %347 = vmatmul.mubr.msk.f32.vlgmr.msra.gmra.mrb[4].mxu1 %vm45_vm0, %v15_v12 }
  0x11   :  { %152 = vmatprep.mubr.f32.mxu0 %v369_v3  ;;  %349 = vmatprep.mubr.msk.f32.mxu1 %vm45_vm0, %v16_v14 }
  0x14   :  { %319 = vmatmul.mubr.msk.f32.gmra.mrb[6].mxu0 %vm45_vm0, %v17_v15  ;;  %350 = vmatmul.mubr.msk.f32.gmra.mrb[6].mxu1 %vm45_vm0, %v17_v15 }
  0x15   :  { %158 = vmatprep.mubr.f32.mxu0 %v369_v3  ;;  %352 = vmatprep.mubr.msk.f32.mxu1 %vm45_vm0, %v18_v16 }
  0x18   :  { %320 = vmatmul.mubr.msk.f32.gmra.mrb[8].mxu0 %vm45_vm0, %v18_v16  ;;  %353 = vmatmul.mubr.msk.f32.gmra.mrb[8].mxu1 %vm45_vm0, %v19_v17 }
  0x19   :  { %164 = vmatprep.mubr.f32.mxu0 %v369_v3  ;;  %355 = vmatprep.mubr.msk.f32.mxu1 %vm45_vm0, %v20_v11 }
  0x1c   :  { %321 = vmatmul.mubr.msk.f32.gmra.mrb[10].mxu0 %vm45_vm0, %v19_v17  ;;  %356 = vmatmul.mubr.msk.f32.gmra.mrb[10].mxu1 %vm45_vm0, %v21_v13 }
  0xdb   :  { %v136_v25 = vpop.f32.mrb[0].mxu0  ;;  %v172_v26 = vpop.f32.mrb[0].mxu1 }
  0xdc   :  { %v137_v27 = vadd.f32 %v136_v25, %v451_v23  ;;  %v173_v28 = vadd.f32 %v172_v26, %v451_v23  ;;  %v138_v29 = vpop.f32.mrb[1].mxu0  ;;  %v174_v30 = vpop.f32.mrb[1].mxu1 }
  0xdd   :  { %v139_v32 = vadd.f32 %v138_v29, %v453_v24  ;;  %v175_v33 = vadd.f32 %v174_v30, %v453_v24 }
  0xde   :  { %288 = vst [vmem:[%s546_s3] sm:$0xff] %v137_v27  ;;  %306 = vst [vmem:[%s546_s3 + $0x90] sm:$0xff] %v173_v28 }
  0xdf   :  { %289 = vst [vmem:[%s546_s3 + $0x8] sm:$0xff] %v139_v32  ;;  %307 = vst [vmem:[%s546_s3 + $0x98] sm:$0xff] %v175_v33  ;;  %v142_v34 = vpop.f32.mrb[2].mxu0  ;;  %v178_v35 = vpop.f32.mrb[2].mxu1 }
  0xe0   :  { %v143_v36 = vadd.f32 %v142_v34, %v451_v23  ;;  %v179_v37 = vadd.f32 %v178_v35, %v451_v23  ;;  %v144_v38 = vpop.f32.mrb[3].mxu0  ;;  %v180_v39 = vpop.f32.mrb[3].mxu1 }
  0xe1   :  { %v145_v41 = vadd.f32 %v144_v38, %v453_v24  ;;  %v181_v42 = vadd.f32 %v180_v39, %v453_v24 }
  0xe2   :  { %291 = vst [vmem:[%s546_s3 + $0x18] sm:$0xff] %v143_v36  ;;  %309 = vst [vmem:[%s546_s3 + $0xa8] sm:$0xff] %v179_v37 }
  0xe3   :  { %292 = vst [vmem:[%s546_s3 + $0x20] sm:$0xff] %v145_v41  ;;  %310 = vst [vmem:[%s546_s3 + $0xb0] sm:$0xff] %v181_v42  ;;  %v148_v43 = vpop.f32.mrb[4].mxu0  ;;  %v348_v44 = vpop.f32.mrb[4].mxu1 }
  0xe4   :  { %v149_v45 = vadd.f32 %v148_v43, %v451_v23  ;;  %v255_v46 = vadd.f32 %v348_v44, %v41_v40  ;;  %v150_v47 = vpop.f32.mrb[5].mxu0  ;;  %v249_v48 = vpop.f32.mrb[5].mxu1 }
  0xe5   :  { %v151_v49 = vadd.f32 %v150_v47, %v453_v24  ;;  %v250_v50 = vadd.f32 %v249_v48, %v41_v40 }
  0xe6   :  { %294 = vst [vmem:[%s546_s3 + $0x30] sm:$0xff] %v149_v45  ;;  %293 = vst [vmem:[%s546_s3 + $0x28] sm:$0xff] %v255_v46 }
  0xe7   :  { %295 = vst [vmem:[%s546_s3 + $0x38] sm:$0xff] %v151_v49  ;;  %290 = vst [vmem:[%s546_s3 + $0x10] sm:$0xff] %v250_v50  ;;  %v154_v51 = vpop.f32.mrb[6].mxu0  ;;  %v351_v52 = vpop.f32.mrb[6].mxu1 }
  0xe8   :  { %v155_v53 = vadd.f32 %v154_v51, %v451_v23  ;;  %v265_v54 = vadd.f32 %v351_v52, %v41_v40  ;;  %v156_v55 = vpop.f32.mrb[7].mxu0  ;;  %v259_v56 = vpop.f32.mrb[7].mxu1 }
  0xe9   :  { %v157_v57 = vadd.f32 %v156_v55, %v453_v24  ;;  %v260_v58 = vadd.f32 %v259_v56, %v41_v40 }
  0xea   :  { %297 = vst [vmem:[%s546_s3 + $0x48] sm:$0xff] %v155_v53  ;;  %299 = vst [vmem:[%s546_s3 + $0x58] sm:$0xff] %v265_v54 }
  0xeb   :  { %298 = vst [vmem:[%s546_s3 + $0x50] sm:$0xff] %v157_v57  ;;  %296 = vst [vmem:[%s546_s3 + $0x40] sm:$0xff] %v260_v58  ;;  %v160_v59 = vpop.f32.mrb[8].mxu0  ;;  %v354_v60 = vpop.f32.mrb[8].mxu1 }
  0xec   :  { %v161_v61 = vadd.f32 %v160_v59, %v451_v23  ;;  %v275_v62 = vadd.f32 %v354_v60, %v41_v40  ;;  %v162_v63 = vpop.f32.mrb[9].mxu0  ;;  %v269_v0 = vpop.f32.mrb[9].mxu1 }
  0xed   :  { %v163_v1 = vadd.f32 %v162_v63, %v453_v24  ;;  %v270_v2 = vadd.f32 %v269_v0, %v41_v40 }
  0xee   :  { %300 = vst [vmem:[%s546_s3 + $0x60] sm:$0xff] %v161_v61  ;;  %305 = vst [vmem:[%s546_s3 + $0x88] sm:$0xff] %v275_v62 }
  0xef   :  { %301 = vst [vmem:[%s546_s3 + $0x68] sm:$0xff] %v163_v1  ;;  %302 = vst [vmem:[%s546_s3 + $0x70] sm:$0xff] %v270_v2  ;;  %v166_v3 = vpop.f32.mrb[10].mxu0  ;;  %v357_v4 = vpop.f32.mrb[10].mxu1 }
  0xf0   :  { %v167_v5 = vadd.f32 %v166_v3, %v451_v23  ;;  %v285_v6 = vadd.f32 %v357_v4, %v41_v40  ;;  %v168_v7 = vpop.f32.mrb[11].mxu0  ;;  %v279_v8 = vpop.f32.mrb[11].mxu1 }
  0xf1   :  { %v169_v9 = vadd.f32 %v168_v7, %v453_v24  ;;  %v280_v10 = vadd.f32 %v279_v8, %v41_v40 }
  0xf2   :  { %303 = vst [vmem:[%s546_s3 + $0x78] sm:$0xff] %v167_v5  ;;  %311 = vst [vmem:[%s546_s3 + $0xb8] sm:$0xff] %v285_v6 }
  0xf3   :  { %304 = vst [vmem:[%s546_s3 + $0x80] sm:$0xff] %v169_v9  ;;  %308 = vst [vmem:[%s546_s3 + $0xa0] sm:$0xff] %v280_v10 }

// kernel: stacked_gru_forward.6
= control target key start
LH: loop header
LB: loop body
LE: loop exit
PB: predicated region body
PF: predicated region fallthrough
CT: control target
= control target key end

     0   :  { %v466_v3 = vmov 0.0   ;;  %s758_s1 = inlined_call_operand.vmem [shape: f32[128,384], index: 1, kind: input, shape index: {}]   ;;  %s759_s0 = inlined_call_operand.vmem [shape: f32[64,128], index: 0, kind: input, shape index: {}]   ;;  %s760_s2 = inlined_call_operand.vmem [shape: f32[1,384], index: 2, kind: input, shape index: {}]   ;;  %s761_s3 = inlined_call_operand.vmem [shape: f32[64,384], index: 3, kind: output, shape index: {}]  }
   0x1   :  { %v23_v0 = vld [vmem:[%s758_s1 + $0x8] sm:$0xff]  ;;  %v26_v1 = vld [vmem:[%s758_s1 + $0x20] sm:$0xff]  ;;  %151 = vmatprep.mubr.f32.mxu0 %v466_v3  ;;  %v25_v5 = vld [vmem:[%s758_s1 + $0x18] sm:$0xff] }
   0x2   :  { %v22_v2 = vld [vmem:[%s758_s1] sm:$0xff]  ;;  %v401_v4 = vpack.c.bf16 %v26_v1, %v23_v0  ;;  %v29_v6 = vld [vmem:[%s758_s1 + $0x38] sm:$0xff]  ;;  %v32_v7 = vld [vmem:[%s758_s1 + $0x50] sm:$0xff] }
   0x3   :  { %v403_v8 = vpack.c.bf16 %v25_v5, %v22_v2  ;;  %v405_v9 = vpack.c.bf16 %v32_v7, %v29_v6  ;;  %v28_v10 = vld [vmem:[%s758_s1 + $0x30] sm:$0xff]  ;;  %v31_v11 = vld [vmem:[%s758_s1 + $0x48] sm:$0xff]  ;;  %v38_v13 = vld [vmem:[%s758_s1 + $0x80] sm:$0xff] }
   0x4   :  { %v35_v12 = vld [vmem:[%s758_s1 + $0x68] sm:$0xff]  ;;  %402 = vmatprep.subr.bf16.mxu0 %v401_v4  ;;  %v407_v14 = vpack.c.bf16 %v31_v11, %v28_v10  ;;  %v34_v15 = vld [vmem:[%s758_s1 + $0x60] sm:$0xff]  ;;  %v37_v17 = vld [vmem:[%s758_s1 + $0x78] sm:$0xff] }
   0x5   :  { %404 = vmatpush1.bf16.msra.mxu0 %v403_v8  ;;  %v409_v16 = vpack.c.bf16 %v38_v13, %v35_v12  ;;  %v24_v18 = vld [vmem:[%s758_s1 + $0x10] sm:$0xff]  ;;  %v27_v19 = vld [vmem:[%s758_s1 + $0x28] sm:$0xff]  ;;  %v41_v20 = vld [vmem:[%s758_s1 + $0x98] sm:$0xff]  ;;  %v411_v25 = vpack.c.bf16 %v37_v17, %v34_v15 }
   0x6   :  { %406 = vmatprep.subr.bf16.mxu0 %v405_v9  ;;  %v44_v21 = vld [vmem:[%s758_s1 + $0xb0] sm:$0xff]  ;;  %v433_v22 = vpack.c.bf16 %v27_v19, %v24_v18  ;;  %v30_v23 = vld [vmem:[%s758_s1 + $0x40] sm:$0xff]  ;;  %v33_v24 = vld [vmem:[%s758_s1 + $0x58] sm:$0xff]  ;;  %v72_v18 = vlaneseq }
   0x7   :  { %v40_v26 = vld [vmem:[%s758_s1 + $0x90] sm:$0xff]  ;;  %v437_v27 = vpack.c.bf16 %v33_v24, %v30_v23  ;;  %v413_v28 = vpack.c.bf16 %v44_v21, %v41_v20  ;;  %v43_v29 = vld [vmem:[%s758_s1 + $0xa8] sm:$0xff]  ;;  %v50_v33 = vld [vmem:[%s758_s1 + $0xe0] sm:$0xff] }
   0x8   :  { %434 = vmatprep.subr.bf16.mxu1 %v433_v22  ;;  %v36_v30 = vld [vmem:[%s758_s1 + $0x70] sm:$0xff]  ;;  %v39_v31 = vld [vmem:[%s758_s1 + $0x88] sm:$0xff]  ;;  %v42_v35 = vld [vmem:[%s758_s1 + $0xa0] sm:$0xff]  ;;  %v415_v37 = vpack.c.bf16 %v43_v29, %v40_v26  ;;  %v73_v19 = vshrl.u32 %v72_v18, 7 }
   0x9   :  { %408 = vmatpush1.bf16.msra.mxu0 %v407_v14  ;;  %436 = vmatpush3.bf16.msra.mxu1 %v433_v22  ;;  %v47_v32 = vld [vmem:[%s758_s1 + $0xc8] sm:$0xff]  ;;  %v441_v34 = vpack.c.bf16 %v39_v31, %v36_v30  ;;  %v45_v36 = vld [vmem:[%s758_s1 + $0xb8] sm:$0xff]  ;;  %v46_v39 = vld [vmem:[%s758_s1 + $0xc0] sm:$0xff] }
   0xa   :  { %410 = vmatprep.subr.bf16.mxu0 %v409_v16  ;;  %438 = vmatprep.subr.bf16.mxu1 %v437_v27  ;;  %v417_v38 = vpack.c.bf16 %v50_v33, %v47_v32  ;;  %v49_v40 = vld [vmem:[%s758_s1 + $0xd8] sm:$0xff]  ;;  %v56_v42 = vld [vmem:[%s758_s1 + $0x110] sm:$0xff]  ;;  %v445_v43 = vpack.c.bf16 %v45_v36, %v42_v35  ;;  %v14_v44 = vld [vmem:[%s759_s0] sm:$0xff]  ;;  %v74_v20 = vsub.s32 0, %v73_v19  ;;  %v78_v22 = vsub.s32 1, %v73_v19 }
   0xb   :  { %v53_v41 = vld [vmem:[%s758_s1 + $0xf8] sm:$0xff]  ;;  %v48_v45 = vld [vmem:[%s758_s1 + $0xd0] sm:$0xff]  ;;  %v51_v46 = vld [vmem:[%s758_s1 + $0xe8] sm:$0xff]  ;;  %389 = vmatprep.mubr.f32.mxu1 %v14_v44  ;;  %v419_v47 = vpack.c.bf16 %v49_v40, %v46_v39 }
   0xc   :  { %v421_v48 = vpack.c.bf16 %v56_v42, %v53_v41  ;;  %v52_v49 = vld [vmem:[%s758_s1 + $0xf0] sm:$0xff]  ;;  %v55_v50 = vld [vmem:[%s758_s1 + $0x108] sm:$0xff]  ;;  %v62_v52 = vld [vmem:[%s758_s1 + $0x140] sm:$0xff]  ;;  %v449_v53 = vpack.c.bf16 %v51_v46, %v48_v45 }
   0xd   :  { %412 = vmatpush1.bf16.msra.mxu0 %v411_v25  ;;  %440 = vmatpush3.bf16.msra.mxu1 %v437_v27  ;;  %v59_v51 = vld [vmem:[%s758_s1 + $0x128] sm:$0xff]  ;;  %v54_v54 = vld [vmem:[%s758_s1 + $0x100] sm:$0xff]  ;;  %v57_v55 = vld [vmem:[%s758_s1 + $0x118] sm:$0xff]  ;;  %v423_v56 = vpack.c.bf16 %v55_v50, %v52_v49  ;;  %v82_v25 = vsub.s32 2, %v73_v19 }
   0xe   :  { %414 = vmatprep.subr.bf16.mxu0 %v413_v28  ;;  %442 = vmatprep.subr.bf16.mxu1 %v441_v34  ;;  %v425_v57 = vpack.c.bf16 %v62_v52, %v59_v51  ;;  %v58_v58 = vld [vmem:[%s758_s1 + $0x120] sm:$0xff]  ;;  %v61_v59 = vld [vmem:[%s758_s1 + $0x138] sm:$0xff]  ;;  %v68_v61 = vld [vmem:[%s758_s1 + $0x170] sm:$0xff]  ;;  %v453_v62 = vpack.c.bf16 %v57_v55, %v54_v54 }
   0xf   :  { %v65_v60 = vld [vmem:[%s758_s1 + $0x158] sm:$0xff]  ;;  %v60_v63 = vld [vmem:[%s758_s1 + $0x130] sm:$0xff]  ;;  %v63_v0 = vld [vmem:[%s758_s1 + $0x148] sm:$0xff]  ;;  %v427_v1 = vpack.c.bf16 %v61_v59, %v58_v58 }
  0x10   :  { %v429_v2 = vpack.c.bf16 %v68_v61, %v65_v60  ;;  %v64_v4 = vld [vmem:[%s758_s1 + $0x150] sm:$0xff]  ;;  %v67_v5 = vld [vmem:[%s758_s1 + $0x168] sm:$0xff]  ;;  %v457_v6 = vpack.c.bf16 %v63_v0, %v60_v63  ;;  %v66_v7 = vld [vmem:[%s758_s1 + $0x160] sm:$0xff] }
  0x11   :  { %416 = vmatpush1.bf16.msra.mxu0 %v415_v37  ;;  %444 = vmatpush3.bf16.msra.mxu1 %v441_v34  ;;  %v69_v8 = vld [vmem:[%s758_s1 + $0x178] sm:$0xff]  ;;  %v431_v9 = vpack.c.bf16 %v67_v5, %v64_v4  ;;  %v15_v11 = vld [vmem:[%s759_s0 + $0x8] sm:$0xff]  ;;  %v16_v12 = vld [vmem:[%s759_s0 + $0x10] sm:$0xff] }
  0x12   :  { %418 = vmatprep.subr.bf16.mxu0 %v417_v38  ;;  %446 = vmatprep.subr.bf16.mxu1 %v445_v43  ;;  %v461_v10 = vpack.c.bf16 %v69_v8, %v66_v7  ;;  %v17_v13 = vld [vmem:[%s759_s0 + $0x18] sm:$0xff]  ;;  %v18_v14 = vld [vmem:[%s759_s0 + $0x20] sm:$0xff]  ;;  %v19_v15 = vld [vmem:[%s759_s0 + $0x28] sm:$0xff] }
  0x13   :  { %v20_v16 = vld [vmem:[%s759_s0 + $0x30] sm:$0xff]  ;;  %v21_v17 = vld [vmem:[%s759_s0 + $0x38] sm:$0xff]  ;;  %v70_v21 = vld [vmem:[%s760_s2] sm:$0x7] }
  0x14   :  { %v666_v23 = vrot.slane %v70_v21, %v74_v20  ;;  %v668_v24 = vrot.slane %v70_v21, %v78_v22  ;;  %v83_v29 = vrot.slane %v70_v21, %v82_v25 }
  0x15   :  { %420 = vmatpush1.bf16.msra.mxu0 %v419_v47  ;;  %448 = vmatpush3.bf16.msra.mxu1 %v445_v43 }
  0x16   :  { %422 = vmatprep.subr.bf16.mxu0 %v421_v48  ;;  %450 = vmatprep.subr.bf16.mxu1 %v449_v53 }
  0x19   :  { %424 = vmatpush1.bf16.msra.mxu0 %v423_v56  ;;  %452 = vmatpush3.bf16.msra.mxu1 %v449_v53 }
  0x1a   :  { %426 = vmatprep.subr.bf16.mxu0 %v425_v57  ;;  %454 = vmatprep.subr.bf16.mxu1 %v453_v62 }
  0x1d   :  { %428 = vmatpush1.bf16.msra.mxu0 %v427_v1  ;;  %456 = vmatpush3.bf16.msra.mxu1 %v453_v62 }
  0x1e   :  { %430 = vmatprep.subr.bf16.mxu0 %v429_v2  ;;  %458 = vmatprep.subr.bf16.mxu1 %v457_v6 }
  0x21   :  { %432 = vmatpush1.bf16.msra.mxu0 %v431_v9  ;;  %460 = vmatpush3.bf16.msra.mxu1 %v457_v6 }
  0x22   :  { %462 = vmatprep.subr.bf16.mxu1 %v461_v10 }
  0x24   :  { %152 = vmatmul.mubr.f32.vlgmr.msra.gmra.mrb[0].mxu0 %v14_v44 }
  0x25   :  { %157 = vmatprep.mubr.f32.mxu0 %v466_v3  ;;  %464 = vmatpush3.bf16.msra.mxu1 %v461_v10 }
  0x28   :  { %158 = vmatmul.mubr.f32.gmra.mrb[2].mxu0 %v15_v11  ;;  %390 = vmatmul.mubr.f32.vlgmr.msra.gmra.mrb[0].mxu1 %v15_v11 }
  0x29   :  { %163 = vmatprep.mubr.f32.mxu0 %v466_v3  ;;  %392 = vmatprep.mubr.f32.mxu1 %v16_v12 }
  0x2c   :  { %164 = vmatmul.mubr.f32.gmra.mrb[4].mxu0 %v16_v12  ;;  %393 = vmatmul.mubr.f32.gmra.mrb[2].mxu1 %v17_v13 }
  0x2d   :  { %169 = vmatprep.mubr.f32.mxu0 %v466_v3  ;;  %395 = vmatprep.mubr.f32.mxu1 %v18_v14 }
  0x30   :  { %170 = vmatmul.mubr.f32.gmra.mrb[6].mxu0 %v17_v13  ;;  %396 = vmatmul.mubr.f32.gmra.mrb[4].mxu1 %v19_v15 }
  0x31   :  { %175 = vmatprep.mubr.f32.mxu0 %v466_v3  ;;  %398 = vmatprep.mubr.f32.mxu1 %v20_v16 }
  0x34   :  { %176 = vmatmul.mubr.f32.gmra.mrb[8].mxu0 %v18_v14  ;;  %399 = vmatmul.mubr.f32.gmra.mrb[6].mxu1 %v21_v17 }
  0x35   :  { %181 = vmatprep.mubr.f32.mxu0 %v466_v3 }
  0x38   :  { %182 = vmatmul.mubr.f32.gmra.mrb[10].mxu0 %v19_v15 }
  0x39   :  { %187 = vmatprep.mubr.f32.mxu0 %v466_v3 }
  0x3c   :  { %188 = vmatmul.mubr.f32.gmra.mrb[12].mxu0 %v20_v16 }
  0x3d   :  { %193 = vmatprep.mubr.f32.mxu0 %v466_v3 }
  0x40   :  { %194 = vmatmul.mubr.f32.gmra.mrb[14].mxu0 %v21_v17 }
  0xf7   :  { %v153_v26 = vpop.f32.mrb[0].mxu0 }
  0xf8   :  { %v154_v27 = vadd.f32 %v153_v26, %v666_v23  ;;  %v155_v28 = vpop.f32.mrb[1].mxu0 }
  0xf9   :  { %v156_v3 = vadd.f32 %v155_v28, %v668_v24 }
  0xfa   :  { %305 = vst [vmem:[%s761_s3] sm:$0xff] %v154_v27 }
  0xfb   :  { %306 = vst [vmem:[%s761_s3 + $0x8] sm:$0xff] %v156_v3  ;;  %v159_v30 = vpop.f32.mrb[2].mxu0  ;;  %v391_v33 = vpop.f32.mrb[0].mxu1 }
  0xfc   :  { %v160_v31 = vadd.f32 %v159_v30, %v666_v23  ;;  %v161_v32 = vpop.f32.mrb[3].mxu0  ;;  %v272_v35 = vadd.f32 %v391_v33, %v83_v29  ;;  %v266_v36 = vpop.f32.mrb[1].mxu1 }
  0xfd   :  { %v162_v34 = vadd.f32 %v161_v32, %v668_v24  ;;  %v267_v37 = vadd.f32 %v266_v36, %v83_v29 }
  0xfe   :  { %308 = vst [vmem:[%s761_s3 + $0x18] sm:$0xff] %v160_v31  ;;  %310 = vst [vmem:[%s761_s3 + $0x28] sm:$0xff] %v272_v35 }
  0xff   :  { %309 = vst [vmem:[%s761_s3 + $0x20] sm:$0xff] %v162_v34  ;;  %v165_v38 = vpop.f32.mrb[4].mxu0  ;;  %307 = vst [vmem:[%s761_s3 + $0x10] sm:$0xff] %v267_v37  ;;  %v394_v41 = vpop.f32.mrb[2].mxu1 }
 0x100   :  { %v166_v39 = vadd.f32 %v165_v38, %v666_v23  ;;  %v167_v40 = vpop.f32.mrb[5].mxu0  ;;  %v282_v43 = vadd.f32 %v394_v41, %v83_v29  ;;  %v276_v44 = vpop.f32.mrb[3].mxu1 }
 0x101   :  { %v168_v42 = vadd.f32 %v167_v40, %v668_v24  ;;  %v277_v45 = vadd.f32 %v276_v44, %v83_v29 }
 0x102   :  { %311 = vst [vmem:[%s761_s3 + $0x30] sm:$0xff] %v166_v39  ;;  %316 = vst [vmem:[%s761_s3 + $0x58] sm:$0xff] %v282_v43 }
 0x103   :  { %312 = vst [vmem:[%s761_s3 + $0x38] sm:$0xff] %v168_v42  ;;  %v171_v46 = vpop.f32.mrb[6].mxu0  ;;  %313 = vst [vmem:[%s761_s3 + $0x40] sm:$0xff] %v277_v45  ;;  %v397_v49 = vpop.f32.mrb[4].mxu1 }
 0x104   :  { %v172_v47 = vadd.f32 %v171_v46, %v666_v23  ;;  %v173_v48 = vpop.f32.mrb[7].mxu0  ;;  %v292_v51 = vadd.f32 %v397_v49, %v83_v29  ;;  %v286_v52 = vpop.f32.mrb[5].mxu1 }
 0x105   :  { %v174_v50 = vadd.f32 %v173_v48, %v668_v24  ;;  %v287_v53 = vadd.f32 %v286_v52, %v83_v29 }
 0x106   :  { %314 = vst [vmem:[%s761_s3 + $0x48] sm:$0xff] %v172_v47  ;;  %322 = vst [vmem:[%s761_s3 + $0x88] sm:$0xff] %v292_v51 }
 0x107   :  { %315 = vst [vmem:[%s761_s3 + $0x50] sm:$0xff] %v174_v50  ;;  %v177_v54 = vpop.f32.mrb[8].mxu0  ;;  %319 = vst [vmem:[%s761_s3 + $0x70] sm:$0xff] %v287_v53  ;;  %v400_v57 = vpop.f32.mrb[6].mxu1 }
 0x108   :  { %v178_v55 = vadd.f32 %v177_v54, %v666_v23  ;;  %v179_v56 = vpop.f32.mrb[9].mxu0  ;;  %v302_v59 = vadd.f32 %v400_v57, %v83_v29  ;;  %v296_v60 = vpop.f32.mrb[7].mxu1 }
 0x109   :  { %v180_v58 = vadd.f32 %v179_v56, %v668_v24  ;;  %v297_v61 = vadd.f32 %v296_v60, %v83_v29 }
 0x10a   :  { %317 = vst [vmem:[%s761_s3 + $0x60] sm:$0xff] %v178_v55  ;;  %328 = vst [vmem:[%s761_s3 + $0xb8] sm:$0xff] %v302_v59 }
 0x10b   :  { %318 = vst [vmem:[%s761_s3 + $0x68] sm:$0xff] %v180_v58  ;;  %v183_v62 = vpop.f32.mrb[10].mxu0  ;;  %325 = vst [vmem:[%s761_s3 + $0xa0] sm:$0xff] %v297_v61 }
 0x10c   :  { %v184_v63 = vadd.f32 %v183_v62, %v666_v23  ;;  %v185_v0 = vpop.f32.mrb[11].mxu0 }
 0x10d   :  { %v186_v1 = vadd.f32 %v185_v0, %v668_v24 }
 0x10e   :  { %320 = vst [vmem:[%s761_s3 + $0x78] sm:$0xff] %v184_v63 }
 0x10f   :  { %321 = vst [vmem:[%s761_s3 + $0x80] sm:$0xff] %v186_v1  ;;  %v189_v2 = vpop.f32.mrb[12].mxu0 }
 0x110   :  { %v190_v4 = vadd.f32 %v189_v2, %v666_v23  ;;  %v191_v5 = vpop.f32.mrb[13].mxu0 }
 0x111   :  { %v192_v6 = vadd.f32 %v191_v5, %v668_v24 }
 0x112   :  { %323 = vst [vmem:[%s761_s3 + $0x90] sm:$0xff] %v190_v4 }
 0x113   :  { %324 = vst [vmem:[%s761_s3 + $0x98] sm:$0xff] %v192_v6  ;;  %v195_v7 = vpop.f32.mrb[14].mxu0 }
 0x114   :  { %v196_v8 = vadd.f32 %v195_v7, %v666_v23  ;;  %v197_v9 = vpop.f32.mrb[15].mxu0 }
 0x115   :  { %v198_v10 = vadd.f32 %v197_v9, %v668_v24 }
 0x116   :  { %326 = vst [vmem:[%s761_s3 + $0xa8] sm:$0xff] %v196_v8 }
 0x117   :  { %327 = vst [vmem:[%s761_s3 + $0xb0] sm:$0xff] %v198_v10 }

// kernel: stacked_gru_forward.5
= control target key start
LH: loop header
LB: loop body
LE: loop exit
PB: predicated region body
PF: predicated region fallthrough
CT: control target
= control target key end

     0   :  { %v2419_v3 = vmov 0.0|0.0   ;;  %v2420_v4 = vmov 0.0   ;;  %vm2421_vm0 = vmmov 0   ;;  %s3092_s2 = inlined_call_operand.vmem [shape: f32[128,384], index: 2, kind: input, shape index: {}]   ;;  %s3093_s1 = inlined_call_operand.vmem [shape: f32[8,128], index: 1, kind: input, shape index: {}]   ;;  %s3094_s3 = inlined_call_operand.vmem [shape: f32[1,384], index: 3, kind: input, shape index: {}]   ;;  %s3095_s0 = inlined_call_operand.vmem [shape: f32[8,8,384], index: 0, kind: input, shape index: {}]   ;;  %s3096_s4 = inlined_call_operand.vmem [shape: f32[8,8,128], index: 4, kind: output, shape index: {}]  }
   0x1   :  { %v24_v0 = vld [vmem:[%s3092_s2 + $0x8] sm:$0xff]  ;;  %v27_v1 = vld [vmem:[%s3092_s2 + $0x20] sm:$0xff]  ;;  %1920 = vmatprep.subr.bf16.mxu1 %v2419_v3  ;;  %156 = vmatprep.mubr.f32.mxu0 %v2420_v4  ;;  %v26_v6 = vld [vmem:[%s3092_s2 + $0x18] sm:$0xff] }
   0x2   :  { %v23_v2 = vld [vmem:[%s3092_s2] sm:$0xff]  ;;  %v2458_v5 = vpack.c.bf16 %v27_v1, %v24_v0  ;;  %v30_v7 = vld [vmem:[%s3092_s2 + $0x38] sm:$0xff]  ;;  %v33_v8 = vld [vmem:[%s3092_s2 + $0x50] sm:$0xff]  ;;  %1640 = vmatprep.mubr.msk.f32.mxu1 %vm2421_vm0, %v2420_v4 }
   0x3   :  { %v2471_v9 = vpack.c.bf16 %v26_v6, %v23_v2  ;;  %v2473_v10 = vpack.c.bf16 %v33_v8, %v30_v7  ;;  %v29_v11 = vld [vmem:[%s3092_s2 + $0x30] sm:$0xff]  ;;  %v32_v12 = vld [vmem:[%s3092_s2 + $0x48] sm:$0xff]  ;;  %v39_v14 = vld [vmem:[%s3092_s2 + $0x80] sm:$0xff] }
   0x4   :  { %v36_v13 = vld [vmem:[%s3092_s2 + $0x68] sm:$0xff]  ;;  %1889 = vmatprep.subr.bf16.mxu0 %v2458_v5  ;;  %v2489_v15 = vpack.c.bf16 %v32_v12, %v29_v11  ;;  %v35_v17 = vld [vmem:[%s3092_s2 + $0x60] sm:$0xff]  ;;  %v38_v18 = vld [vmem:[%s3092_s2 + $0x78] sm:$0xff] }
   0x5   :  { %1891 = vmatpush1.bf16.msra.mxu0 %v2471_v9  ;;  %v2492_v16 = vpack.c.bf16 %v39_v14, %v36_v13  ;;  %v42_v19 = vld [vmem:[%s3092_s2 + $0x98] sm:$0xff]  ;;  %v45_v20 = vld [vmem:[%s3092_s2 + $0xb0] sm:$0xff]  ;;  %v2507_v21 = vpack.c.bf16 %v38_v18, %v35_v17  ;;  %v44_v24 = vld [vmem:[%s3092_s2 + $0xa8] sm:$0xff]  ;;  %v77_v18 = vlaneseq }
   0x6   :  { %1893 = vmatprep.subr.bf16.mxu0 %v2473_v10  ;;  %v2510_v22 = vpack.c.bf16 %v45_v20, %v42_v19  ;;  %v41_v23 = vld [vmem:[%s3092_s2 + $0x90] sm:$0xff]  ;;  %v48_v25 = vld [vmem:[%s3092_s2 + $0xc8] sm:$0xff]  ;;  %v51_v26 = vld [vmem:[%s3092_s2 + $0xe0] sm:$0xff] }
   0x7   :  { %v25_v27 = vld [vmem:[%s3092_s2 + $0x10] sm:$0xff]  ;;  %v28_v28 = vld [vmem:[%s3092_s2 + $0x28] sm:$0xff]  ;;  %v31_v30 = vld [vmem:[%s3092_s2 + $0x40] sm:$0xff]  ;;  %v2536_v31 = vpack.c.bf16 %v44_v24, %v41_v23  ;;  %v2542_v33 = vpack.c.bf16 %v51_v26, %v48_v25  ;;  %v78_v19 = vshrl.u32 %v77_v18, 7 }
   0x8   :  { %v2530_v29 = vpack.c.bf16 %v28_v28, %v25_v27  ;;  %v34_v32 = vld [vmem:[%s3092_s2 + $0x58] sm:$0xff]  ;;  %v47_v34 = vld [vmem:[%s3092_s2 + $0xc0] sm:$0xff]  ;;  %v57_v38 = vld [vmem:[%s3092_s2 + $0x110] sm:$0xff] }
   0x9   :  { %1895 = vmatpush1.bf16.msra.mxu0 %v2489_v15  ;;  %v50_v35 = vld [vmem:[%s3092_s2 + $0xd8] sm:$0xff]  ;;  %v2554_v37 = vpack.c.bf16 %v34_v32, %v31_v30  ;;  %v37_v39 = vld [vmem:[%s3092_s2 + $0x70] sm:$0xff]  ;;  %v40_v40 = vld [vmem:[%s3092_s2 + $0x88] sm:$0xff]  ;;  %v79_v20 = vsub.s32 0, %v78_v19  ;;  %v83_v25 = vsub.s32 1, %v78_v19 }
   0xa   :  { %1897 = vmatprep.subr.bf16.mxu0 %v2492_v16  ;;  %v54_v36 = vld [vmem:[%s3092_s2 + $0xf8] sm:$0xff]  ;;  %1922 = vmatpush3.bf16.msra.mxu1 %v2530_v29  ;;  %v2567_v41 = vpack.c.bf16 %v50_v35, %v47_v34  ;;  %v53_v43 = vld [vmem:[%s3092_s2 + $0xf0] sm:$0xff]  ;;  %v56_v44 = vld [vmem:[%s3092_s2 + $0x108] sm:$0xff]  ;;  %v2582_v46 = vpack.c.bf16 %v40_v40, %v37_v39 }
   0xb   :  { %1923 = vmatprep.subr.bf16.mxu1 %v2419_v3  ;;  %v2570_v42 = vpack.c.bf16 %v57_v38, %v54_v36  ;;  %v60_v45 = vld [vmem:[%s3092_s2 + $0x128] sm:$0xff]  ;;  %v63_v47 = vld [vmem:[%s3092_s2 + $0x140] sm:$0xff]  ;;  %v46_v49 = vld [vmem:[%s3092_s2 + $0xb8] sm:$0xff]  ;;  %v2595_v50 = vpack.c.bf16 %v56_v44, %v53_v43 }
   0xc   :  { %v43_v48 = vld [vmem:[%s3092_s2 + $0xa0] sm:$0xff]  ;;  %v2598_v51 = vpack.c.bf16 %v63_v47, %v60_v45  ;;  %v62_v53 = vld [vmem:[%s3092_s2 + $0x138] sm:$0xff]  ;;  %v69_v56 = vld [vmem:[%s3092_s2 + $0x170] sm:$0xff] }
   0xd   :  { %1899 = vmatpush1.bf16.msra.mxu0 %v2507_v21  ;;  %v59_v52 = vld [vmem:[%s3092_s2 + $0x120] sm:$0xff]  ;;  %v66_v54 = vld [vmem:[%s3092_s2 + $0x158] sm:$0xff]  ;;  %v2610_v55 = vpack.c.bf16 %v46_v49, %v43_v48  ;;  %v49_v57 = vld [vmem:[%s3092_s2 + $0xd0] sm:$0xff]  ;;  %v87_v48 = vsub.s32 2, %v78_v19 }
   0xe   :  { %1901 = vmatprep.subr.bf16.mxu0 %v2510_v22  ;;  %1925 = vmatpush3.bf16.msra.mxu1 %v2554_v37  ;;  %v52_v58 = vld [vmem:[%s3092_s2 + $0xe8] sm:$0xff]  ;;  %v2623_v59 = vpack.c.bf16 %v62_v53, %v59_v52  ;;  %v2626_v60 = vpack.c.bf16 %v69_v56, %v66_v54  ;;  %v65_v61 = vld [vmem:[%s3092_s2 + $0x150] sm:$0xff]  ;;  %v55_v0 = vld [vmem:[%s3092_s2 + $0x100] sm:$0xff] }
   0xf   :  { %1926 = vmatprep.subr.bf16.mxu1 %v2419_v3  ;;  %v68_v62 = vld [vmem:[%s3092_s2 + $0x168] sm:$0xff]  ;;  %v2635_v63 = vpack.c.bf16 %v52_v58, %v49_v57  ;;  %v58_v1 = vld [vmem:[%s3092_s2 + $0x118] sm:$0xff]  ;;  %v61_v7 = vld [vmem:[%s3092_s2 + $0x130] sm:$0xff] }
  0x10   :  { %v2645_v2 = vpack.c.bf16 %v68_v62, %v65_v61  ;;  %v2649_v6 = vpack.c.bf16 %v58_v1, %v55_v0  ;;  %v64_v8 = vld [vmem:[%s3092_s2 + $0x148] sm:$0xff]  ;;  %v2662_v11 = vld [vmem:[%s3093_s1] sm:$0xff]  ;;  %v70_v14 = vld [vmem:[%s3092_s2 + $0x178] sm:$0xff] }
  0x11   :  { %1903 = vmatpush1.bf16.msra.mxu0 %v2536_v31  ;;  %v2665_v12 = vpack.c.bf16 %v64_v8, %v61_v7  ;;  %v67_v13 = vld [vmem:[%s3092_s2 + $0x160] sm:$0xff]  ;;  %v74_v38 = vld [vmem:[%s3095_s0 + $0x8] sm:$0xff]  ;;  %v75_v56 = vld [vmem:[%s3095_s0 + $0x10] sm:$0xff] }
  0x12   :  { %1905 = vmatprep.subr.bf16.mxu0 %v2542_v33  ;;  %1928 = vmatpush3.bf16.msra.mxu1 %v2582_v46  ;;  %v2679_v17 = vpack.c.bf16 %v70_v14, %v67_v13  ;;  %v71_v23 = vld [vmem:[%s3094_s3] sm:$0x7] }
  0x13   :  { %1929 = vmatprep.subr.bf16.mxu1 %v2419_v3  ;;  %v2721_v24 = vrot.slane %v71_v23, %v79_v20  ;;  %v73_v26 = vld [vmem:[%s3095_s0] sm:$0xff]  ;;  %v2727_v34 = vrot.slane %v71_v23, %v83_v25  ;;  %v2733_v49 = vrot.slane %v71_v23, %v87_v48 }
  0x15   :  { %1907 = vmatpush1.bf16.msra.mxu0 %v2567_v41 }
  0x16   :  { %1909 = vmatprep.subr.bf16.mxu0 %v2570_v42  ;;  %1931 = vmatpush3.bf16.msra.mxu1 %v2610_v55 }
  0x17   :  { %1932 = vmatprep.subr.bf16.mxu1 %v2419_v3 }
  0x19   :  { %1911 = vmatpush1.bf16.msra.mxu0 %v2595_v50 }
  0x1a   :  { %1913 = vmatprep.subr.bf16.mxu0 %v2598_v51  ;;  %1934 = vmatpush3.bf16.msra.mxu1 %v2635_v63 }
  0x1b   :  { %1935 = vmatprep.subr.bf16.mxu1 %v2419_v3 }
  0x1d   :  { %1915 = vmatpush1.bf16.msra.mxu0 %v2623_v59 }
  0x1e   :  { %1917 = vmatprep.subr.bf16.mxu0 %v2626_v60  ;;  %1937 = vmatpush3.bf16.msra.mxu1 %v2649_v6 }
  0x1f   :  { %1938 = vmatprep.subr.bf16.mxu1 %v2419_v3 }
  0x21   :  { %1919 = vmatpush1.bf16.msra.mxu0 %v2645_v2 }
  0x22   :  { %1945 = vmatprep.subr.bf16.mxu0 %v2458_v5  ;;  %1940 = vmatpush3.bf16.msra.mxu1 %v2665_v12 }
  0x23   :  { %1941 = vmatprep.subr.bf16.mxu1 %v2419_v3 }
  0x24   :  { %157 = vmatmul.mubr.f32.vlgmr.msra.gmra.mrb[0].mxu0 %v2662_v11 }
  0x25   :  { %1947 = vmatpush1.bf16.msra.mxu0 %v2471_v9  ;;  %322 = vmatprep.mubr.f32.mxu0 %v2420_v4 }
  0x26   :  { %1949 = vmatprep.subr.bf16.mxu0 %v2473_v10  ;;  %1943 = vmatpush3.bf16.msra.mxu1 %v2679_v17 }
  0x27   :  { %1976 = vmatprep.subr.bf16.mxu1 %v2419_v3 }
  0x29   :  { %1951 = vmatpush1.bf16.msra.mxu0 %v2489_v15  ;;  %1641 = vmatmul.mubr.f32.vlgmr.msra.gmra.mrb[0].mxu1 %v2662_v11 }
  0x2a   :  { %1953 = vmatprep.subr.bf16.mxu0 %v2492_v16  ;;  %1978 = vmatpush3.bf16.msra.mxu1 %v2530_v29 }
  0x2b   :  { %1979 = vmatprep.subr.bf16.mxu1 %v2419_v3  ;;  %1675 = vmatprep.mubr.msk.f32.mxu1 %vm2421_vm0, %v2420_v4 }
  0x2d   :  { %1955 = vmatpush1.bf16.msra.mxu0 %v2507_v21 }
  0x2e   :  { %1957 = vmatprep.subr.bf16.mxu0 %v2510_v22  ;;  %1981 = vmatpush3.bf16.msra.mxu1 %v2554_v37 }
  0x2f   :  { %1982 = vmatprep.subr.bf16.mxu1 %v2419_v3 }
  0x31   :  { %1959 = vmatpush1.bf16.msra.mxu0 %v2536_v31 }
  0x32   :  { %1961 = vmatprep.subr.bf16.mxu0 %v2542_v33  ;;  %1984 = vmatpush3.bf16.msra.mxu1 %v2582_v46 }
  0x33   :  { %1985 = vmatprep.subr.bf16.mxu1 %v2419_v3 }
  0x35   :  { %1963 = vmatpush1.bf16.msra.mxu0 %v2567_v41 }
  0x36   :  { %1965 = vmatprep.subr.bf16.mxu0 %v2570_v42  ;;  %1987 = vmatpush3.bf16.msra.mxu1 %v2610_v55 }
  0x37   :  { %1988 = vmatprep.subr.bf16.mxu1 %v2419_v3 }
  0x39   :  { %1967 = vmatpush1.bf16.msra.mxu0 %v2595_v50 }
  0x3a   :  { %1969 = vmatprep.subr.bf16.mxu0 %v2598_v51  ;;  %1990 = vmatpush3.bf16.msra.mxu1 %v2635_v63 }
  0x3b   :  { %1991 = vmatprep.subr.bf16.mxu1 %v2419_v3 }
  0x3d   :  { %1971 = vmatpush1.bf16.msra.mxu0 %v2623_v59 }
  0x3e   :  { %1973 = vmatprep.subr.bf16.mxu0 %v2626_v60  ;;  %1993 = vmatpush3.bf16.msra.mxu1 %v2649_v6 }
  0x3f   :  { %1994 = vmatprep.subr.bf16.mxu1 %v2419_v3 }
  0x41   :  { %1975 = vmatpush1.bf16.msra.mxu0 %v2645_v2 }
  0x42   :  { %2001 = vmatprep.subr.bf16.mxu0 %v2458_v5  ;;  %1996 = vmatpush3.bf16.msra.mxu1 %v2665_v12 }
  0x43   :  { %1997 = vmatprep.subr.bf16.mxu1 %v2419_v3 }
  0x46   :  { %1999 = vmatpush3.bf16.msra.mxu1 %v2679_v17 }
  0x47   :  { %2032 = vmatprep.subr.bf16.mxu1 %v2419_v3 }
  0xf7   :  { %v158_v27 = vpop.f32.mrb[0].mxu0 }
  0xf8   :  { %v159_v28 = vadd.f32 %v158_v27, %v2721_v24  ;;  %v160_v30 = vpop.f32.mrb[1].mxu0  ;;  %v1431_v27 = vld [vmem:[%s3095_s0 + $0x20] sm:$0xff] }
  0xf9   :  { %v161_v36 = vadd.f32 %v160_v30, %v2727_v34 }
  0xfa   :  { %v233_v32 = vadd.f32 %v159_v28, %v73_v26 }
  0xfb   :  { %v240_v43 = vadd.f32 %v161_v36, %v74_v38 }
  0xfc   :  { %v1428_v35 = vmul.f32 -1.442695, %v233_v32  ;;  %v229_v39 = vpop.f32.mrb[0].mxu1 }
  0xfd   :  { %v1642_v40 = vpop.f32.mrb[1].mxu1  ;;  %v1429_v44 = vmul.f32 -1.442695, %v240_v43  ;;  %v230_v52 = vadd.f32 %v229_v39, %v2733_v49 }
  0xfe   :  { %2339 = vpow2.f32 %v1428_v35  ;;  %v1432_v40 = vld [vmem:[%s3095_s0 + $0x28] sm:$0xff] }
  0xff   :  { %2341 = vpow2.f32 %v1429_v44 }
 0x108   :  { %v2340_v45 = vpop.eup %2339 }
 0x109   :  { %v237_v47 = vadd.f32 1.0, %v2340_v45  ;;  %v2342_v53 = vpop.eup %2341 }
 0x10a   :  { %v244_v58 = vadd.f32 1.0, %v2342_v53 }
 0x10b   :  { %2343 = vrcp.f32 %v237_v47 }
 0x115   :  { %v2344_v54 = vpop.eup %2343 }
 0x116   :  { %v247_v57 = vmul.f32 %v2344_v54, %v230_v52 }
 0x118   :  { %v248_v61 = vadd.f32 %v247_v57, %v75_v56  ;;  %v1436_v56 = vld [vmem:[%s3095_s0 + $0x30] sm:$0xff] }
 0x11a   :  { %2345 = vtanh.f32 %v248_v61 }
 0x11b   :  { %2347 = vrcp.f32 %v244_v58 }
 0x124   :  { %v2346_v62 = vpop.eup %2345 }
 0x125   :  { %v250_v0 = vsub.f32 %v2662_v11, %v2346_v62  ;;  %v2348_v1 = vpop.eup %2347  ;;  %v1430_v11 = vld [vmem:[%s3095_s0 + $0x18] sm:$0xff] }
 0x127   :  { %v251_v7 = vmul.f32 %v2348_v1, %v250_v0 }
 0x129   :  { %v2740_v8 = vadd.f32 %v2346_v62, %v251_v7 }
 0x12b   :  { %253 = vst [vmem:[%s3096_s4] sm:$0xff] %v2740_v8  ;;  %323 = vmatmul.mubr.f32.vlgmr.msra.gmra.mrb[2].mxu0 %v2740_v8  ;;  %1676 = vmatmul.mubr.f32.vlgmr.msra.gmra.mrb[2].mxu1 %v2740_v8 }
 0x12c   :  { %2003 = vmatpush1.bf16.msra.mxu0 %v2471_v9  ;;  %2034 = vmatpush3.bf16.msra.mxu1 %v2530_v29 }
 0x12d   :  { %2005 = vmatprep.subr.bf16.mxu0 %v2473_v10  ;;  %2035 = vmatprep.subr.bf16.mxu1 %v2419_v3 }
 0x12e   :  { %489 = vmatprep.mubr.f32.mxu0 %v2420_v4  ;;  %1710 = vmatprep.mubr.msk.f32.mxu1 %vm2421_vm0, %v2420_v4 }
 0x130   :  { %2007 = vmatpush1.bf16.msra.mxu0 %v2489_v15  ;;  %2037 = vmatpush3.bf16.msra.mxu1 %v2554_v37 }
 0x131   :  { %2009 = vmatprep.subr.bf16.mxu0 %v2492_v16  ;;  %2038 = vmatprep.subr.bf16.mxu1 %v2419_v3 }
 0x134   :  { %2011 = vmatpush1.bf16.msra.mxu0 %v2507_v21  ;;  %2040 = vmatpush3.bf16.msra.mxu1 %v2582_v46 }
 0x135   :  { %2013 = vmatprep.subr.bf16.mxu0 %v2510_v22  ;;  %2041 = vmatprep.subr.bf16.mxu1 %v2419_v3 }
 0x138   :  { %2015 = vmatpush1.bf16.msra.mxu0 %v2536_v31  ;;  %2043 = vmatpush3.bf16.msra.mxu1 %v2610_v55 }
 0x139   :  { %2017 = vmatprep.subr.bf16.mxu0 %v2542_v33  ;;  %2044 = vmatprep.subr.bf16.mxu1 %v2419_v3 }
 0x13c   :  { %2019 = vmatpush1.bf16.msra.mxu0 %v2567_v41  ;;  %2046 = vmatpush3.bf16.msra.mxu1 %v2635_v63 }
 0x13d   :  { %2021 = vmatprep.subr.bf16.mxu0 %v2570_v42  ;;  %2047 = vmatprep.subr.bf16.mxu1 %v2419_v3 }
 0x140   :  { %2023 = vmatpush1.bf16.msra.mxu0 %v2595_v50  ;;  %2049 = vmatpush3.bf16.msra.mxu1 %v2649_v6 }
 0x141   :  { %2025 = vmatprep.subr.bf16.mxu0 %v2598_v51  ;;  %2050 = vmatprep.subr.bf16.mxu1 %v2419_v3 }
 0x144   :  { %2027 = vmatpush1.bf16.msra.mxu0 %v2623_v59  ;;  %2052 = vmatpush3.bf16.msra.mxu1 %v2665_v12 }
 0x145   :  { %2029 = vmatprep.subr.bf16.mxu0 %v2626_v60  ;;  %2053 = vmatprep.subr.bf16.mxu1 %v2419_v3 }
 0x148   :  { %2031 = vmatpush1.bf16.msra.mxu0 %v2645_v2  ;;  %2055 = vmatpush3.bf16.msra.mxu1 %v2679_v17 }
 0x149   :  { %2057 = vmatprep.subr.bf16.mxu0 %v2458_v5  ;;  %2088 = vmatprep.subr.bf16.mxu1 %v2419_v3 }
 0x1fe   :  { %v324_v13 = vpop.f32.mrb[2].mxu0  ;;  %v395_v14 = vpop.f32.mrb[2].mxu1 }
 0x1ff   :  { %v325_v18 = vadd.f32 %v324_v13, %v2721_v24  ;;  %v326_v19 = vpop.f32.mrb[3].mxu0  ;;  %v1677_v20 = vpop.f32.mrb[3].mxu1  ;;  %v396_v38 = vadd.f32 %v395_v14, %v2733_v49 }
 0x200   :  { %v327_v26 = vadd.f32 %v326_v19, %v2727_v34 }
 0x201   :  { %v399_v23 = vadd.f32 %v1430_v11, %v325_v18  ;;  %v1437_v11 = vld [vmem:[%s3095_s0 + $0x38] sm:$0xff] }
 0x202   :  { %v406_v28 = vadd.f32 %v1431_v27, %v327_v26  ;;  %v1438_v26 = vld [vmem:[%s3095_s0 + $0x40] sm:$0xff] }
 0x203   :  { %v1433_v25 = vmul.f32 -1.442695, %v399_v23 }
 0x204   :  { %v1434_v30 = vmul.f32 -1.442695, %v406_v28 }
 0x205   :  { %2349 = vpow2.f32 %v1433_v25 }
 0x206   :  { %2351 = vpow2.f32 %v1434_v30 }
 0x20f   :  { %v2350_v32 = vpop.eup %2349 }
 0x210   :  { %v403_v35 = vadd.f32 1.0, %v2350_v32  ;;  %v2352_v36 = vpop.eup %2351 }
 0x211   :  { %v410_v45 = vadd.f32 1.0, %v2352_v36 }
 0x212   :  { %2353 = vrcp.f32 %v403_v35 }
 0x21c   :  { %v2354_v39 = vpop.eup %2353 }
 0x21d   :  { %v413_v43 = vmul.f32 %v2354_v39, %v396_v38 }
 0x21f   :  { %v414_v44 = vadd.f32 %v1432_v40, %v413_v43  ;;  %v1442_v40 = vld [vmem:[%s3095_s0 + $0x48] sm:$0xff] }
 0x221   :  { %2355 = vtanh.f32 %v414_v44 }
 0x222   :  { %2357 = vrcp.f32 %v410_v45 }
 0x22b   :  { %v2356_v47 = vpop.eup %2355 }
 0x22c   :  { %v416_v48 = vsub.f32 %v2740_v8, %v2356_v47  ;;  %v2358_v52 = vpop.eup %2357 }
 0x22e   :  { %v417_v53 = vmul.f32 %v2358_v52, %v416_v48 }
 0x230   :  { %v2796_v54 = vadd.f32 %v2356_v47, %v417_v53 }
 0x232   :  { %1435 = vst [vmem:[%s3096_s4 + $0x8] sm:$0xff] %v2796_v54  ;;  %490 = vmatmul.mubr.f32.vlgmr.msra.gmra.mrb[4].mxu0 %v2796_v54  ;;  %1711 = vmatmul.mubr.f32.vlgmr.msra.gmra.mrb[4].mxu1 %v2796_v54 }
 0x233   :  { %2059 = vmatpush1.bf16.msra.mxu0 %v2471_v9  ;;  %2090 = vmatpush3.bf16.msra.mxu1 %v2530_v29 }
 0x234   :  { %2061 = vmatprep.subr.bf16.mxu0 %v2473_v10  ;;  %2091 = vmatprep.subr.bf16.mxu1 %v2419_v3 }
 0x235   :  { %656 = vmatprep.mubr.f32.mxu0 %v2420_v4  ;;  %1745 = vmatprep.mubr.msk.f32.mxu1 %vm2421_vm0, %v2420_v4 }
 0x237   :  { %2063 = vmatpush1.bf16.msra.mxu0 %v2489_v15  ;;  %2093 = vmatpush3.bf16.msra.mxu1 %v2554_v37 }
 0x238   :  { %2065 = vmatprep.subr.bf16.mxu0 %v2492_v16  ;;  %2094 = vmatprep.subr.bf16.mxu1 %v2419_v3 }
 0x23b   :  { %2067 = vmatpush1.bf16.msra.mxu0 %v2507_v21  ;;  %2096 = vmatpush3.bf16.msra.mxu1 %v2582_v46 }
 0x23c   :  { %2069 = vmatprep.subr.bf16.mxu0 %v2510_v22  ;;  %2097 = vmatprep.subr.bf16.mxu1 %v2419_v3 }
 0x23f   :  { %2071 = vmatpush1.bf16.msra.mxu0 %v2536_v31  ;;  %2099 = vmatpush3.bf16.msra.mxu1 %v2610_v55 }
 0x240   :  { %2073 = vmatprep.subr.bf16.mxu0 %v2542_v33  ;;  %2100 = vmatprep.subr.bf16.mxu1 %v2419_v3 }
 0x243   :  { %2075 = vmatpush1.bf16.msra.mxu0 %v2567_v41  ;;  %2102 = vmatpush3.bf16.msra.mxu1 %v2635_v63 }
 0x244   :  { %2077 = vmatprep.subr.bf16.mxu0 %v2570_v42  ;;  %2103 = vmatprep.subr.bf16.mxu1 %v2419_v3 }
 0x247   :  { %2079 = vmatpush1.bf16.msra.mxu0 %v2595_v50  ;;  %2105 = vmatpush3.bf16.msra.mxu1 %v2649_v6 }
 0x248   :  { %2081 = vmatprep.subr.bf16.mxu0 %v2598_v51  ;;  %2106 = vmatprep.subr.bf16.mxu1 %v2419_v3 }
 0x24b   :  { %2083 = vmatpush1.bf16.msra.mxu0 %v2623_v59  ;;  %2108 = vmatpush3.bf16.msra.mxu1 %v2665_v12 }
 0x24c   :  { %2085 = vmatprep.subr.bf16.mxu0 %v2626_v60  ;;  %2109 = vmatprep.subr.bf16.mxu1 %v2419_v3 }
 0x24f   :  { %2087 = vmatpush1.bf16.msra.mxu0 %v2645_v2  ;;  %2111 = vmatpush3.bf16.msra.mxu1 %v2679_v17 }
 0x250   :  { %2113 = vmatprep.subr.bf16.mxu0 %v2458_v5  ;;  %2144 = vmatprep.subr.bf16.mxu1 %v2419_v3 }
 0x305   :  { %v491_v57 = vpop.f32.mrb[4].mxu0  ;;  %v562_v58 = vpop.f32.mrb[4].mxu1 }
 0x306   :  { %v492_v61 = vadd.f32 %v491_v57, %v2721_v24  ;;  %v493_v62 = vpop.f32.mrb[5].mxu0  ;;  %v1712_v0 = vpop.f32.mrb[5].mxu1  ;;  %v563_v23 = vadd.f32 %v562_v58, %v2733_v49 }
 0x307   :  { %v494_v8 = vadd.f32 %v493_v62, %v2727_v34 }
 0x308   :  { %v566_v1 = vadd.f32 %v1436_v56, %v492_v61  ;;  %v1443_v56 = vld [vmem:[%s3095_s0 + $0x50] sm:$0xff] }
 0x309   :  { %v573_v13 = vadd.f32 %v1437_v11, %v494_v8  ;;  %v1444_v8 = vld [vmem:[%s3095_s0 + $0x58] sm:$0xff] }
 0x30a   :  { %v1439_v7 = vmul.f32 -1.442695, %v566_v1 }
 0x30b   :  { %v1440_v14 = vmul.f32 -1.442695, %v573_v13 }
 0x30c   :  { %2359 = vpow2.f32 %v1439_v7 }
 0x30d   :  { %2361 = vpow2.f32 %v1440_v14 }
 0x316   :  { %v2360_v18 = vpop.eup %2359 }
 0x317   :  { %v570_v19 = vadd.f32 1.0, %v2360_v18  ;;  %v2362_v20 = vpop.eup %2361 }
 0x318   :  { %v577_v30 = vadd.f32 1.0, %v2362_v20 }
 0x319   :  { %2363 = vrcp.f32 %v570_v19 }
 0x323   :  { %v2364_v25 = vpop.eup %2363 }
 0x324   :  { %v580_v27 = vmul.f32 %v2364_v25, %v563_v23 }
 0x326   :  { %v581_v28 = vadd.f32 %v1438_v26, %v580_v27  ;;  %v1448_v26 = vld [vmem:[%s3095_s0 + $0x60] sm:$0xff] }
 0x328   :  { %2365 = vtanh.f32 %v581_v28 }
 0x329   :  { %2367 = vrcp.f32 %v577_v30 }
 0x332   :  { %v2366_v32 = vpop.eup %2365 }
 0x333   :  { %v583_v35 = vsub.f32 %v2796_v54, %v2366_v32  ;;  %v2368_v36 = vpop.eup %2367 }
 0x335   :  { %v584_v38 = vmul.f32 %v2368_v36, %v583_v35 }
 0x337   :  { %v2852_v39 = vadd.f32 %v2366_v32, %v584_v38 }
 0x339   :  { %1441 = vst [vmem:[%s3096_s4 + $0x10] sm:$0xff] %v2852_v39  ;;  %657 = vmatmul.mubr.f32.vlgmr.msra.gmra.mrb[6].mxu0 %v2852_v39  ;;  %1746 = vmatmul.mubr.f32.vlgmr.msra.gmra.mrb[6].mxu1 %v2852_v39 }
 0x33a   :  { %2115 = vmatpush1.bf16.msra.mxu0 %v2471_v9  ;;  %2146 = vmatpush3.bf16.msra.mxu1 %v2530_v29 }
 0x33b   :  { %2117 = vmatprep.subr.bf16.mxu0 %v2473_v10  ;;  %2147 = vmatprep.subr.bf16.mxu1 %v2419_v3 }
 0x33c   :  { %823 = vmatprep.mubr.f32.mxu0 %v2420_v4  ;;  %1780 = vmatprep.mubr.msk.f32.mxu1 %vm2421_vm0, %v2420_v4 }
 0x33e   :  { %2119 = vmatpush1.bf16.msra.mxu0 %v2489_v15  ;;  %2149 = vmatpush3.bf16.msra.mxu1 %v2554_v37 }
 0x33f   :  { %2121 = vmatprep.subr.bf16.mxu0 %v2492_v16  ;;  %2150 = vmatprep.subr.bf16.mxu1 %v2419_v3 }
 0x342   :  { %2123 = vmatpush1.bf16.msra.mxu0 %v2507_v21  ;;  %2152 = vmatpush3.bf16.msra.mxu1 %v2582_v46 }
 0x343   :  { %2125 = vmatprep.subr.bf16.mxu0 %v2510_v22  ;;  %2153 = vmatprep.subr.bf16.mxu1 %v2419_v3 }
 0x346   :  { %2127 = vmatpush1.bf16.msra.mxu0 %v2536_v31  ;;  %2155 = vmatpush3.bf16.msra.mxu1 %v2610_v55 }
 0x347   :  { %2129 = vmatprep.subr.bf16.mxu0 %v2542_v33  ;;  %2156 = vmatprep.subr.bf16.mxu1 %v2419_v3 }
 0x34a   :  { %2131 = vmatpush1.bf16.msra.mxu0 %v2567_v41  ;;  %2158 = vmatpush3.bf16.msra.mxu1 %v2635_v63 }
 0x34b   :  { %2133 = vmatprep.subr.bf16.mxu0 %v2570_v42  ;;  %2159 = vmatprep.subr.bf16.mxu1 %v2419_v3 }
 0x34e   :  { %2135 = vmatpush1.bf16.msra.mxu0 %v2595_v50  ;;  %2161 = vmatpush3.bf16.msra.mxu1 %v2649_v6 }
 0x34f   :  { %2137 = vmatprep.subr.bf16.mxu0 %v2598_v51  ;;  %2162 = vmatprep.subr.bf16.mxu1 %v2419_v3 }
 0x352   :  { %2139 = vmatpush1.bf16.msra.mxu0 %v2623_v59  ;;  %2164 = vmatpush3.bf16.msra.mxu1 %v2665_v12 }
 0x353   :  { %2141 = vmatprep.subr.bf16.mxu0 %v2626_v60  ;;  %2165 = vmatprep.subr.bf16.mxu1 %v2419_v3 }
 0x356   :  { %2143 = vmatpush1.bf16.msra.mxu0 %v2645_v2  ;;  %2167 = vmatpush3.bf16.msra.mxu1 %v2679_v17 }
 0x357   :  { %2169 = vmatprep.subr.bf16.mxu0 %v2458_v5  ;;  %2200 = vmatprep.subr.bf16.mxu1 %v2419_v3 }
 0x40c   :  { %v658_v43 = vpop.f32.mrb[6].mxu0  ;;  %v729_v44 = vpop.f32.mrb[6].mxu1 }
 0x40d   :  { %v659_v45 = vadd.f32 %v658_v43, %v2721_v24  ;;  %v660_v47 = vpop.f32.mrb[7].mxu0  ;;  %v1747_v48 = vpop.f32.mrb[7].mxu1  ;;  %v730_v1 = vadd.f32 %v729_v44, %v2733_v49 }
 0x40e   :  { %v661_v54 = vadd.f32 %v660_v47, %v2727_v34 }
 0x40f   :  { %v733_v52 = vadd.f32 %v1442_v40, %v659_v45  ;;  %v1449_v40 = vld [vmem:[%s3095_s0 + $0x68] sm:$0xff] }
 0x410   :  { %v740_v57 = vadd.f32 %v1443_v56, %v661_v54  ;;  %v1450_v54 = vld [vmem:[%s3095_s0 + $0x70] sm:$0xff] }
 0x411   :  { %v1445_v53 = vmul.f32 -1.442695, %v733_v52 }
 0x412   :  { %v1446_v58 = vmul.f32 -1.442695, %v740_v57 }
 0x413   :  { %2369 = vpow2.f32 %v1445_v53 }
 0x414   :  { %2371 = vpow2.f32 %v1446_v58 }
 0x41d   :  { %v2370_v61 = vpop.eup %2369 }
 0x41e   :  { %v737_v62 = vadd.f32 1.0, %v2370_v61  ;;  %v2372_v0 = vpop.eup %2371 }
 0x41f   :  { %v744_v14 = vadd.f32 1.0, %v2372_v0 }
 0x420   :  { %2373 = vrcp.f32 %v737_v62 }
 0x42a   :  { %v2374_v7 = vpop.eup %2373 }
 0x42b   :  { %v747_v11 = vmul.f32 %v2374_v7, %v730_v1 }
 0x42d   :  { %v748_v13 = vadd.f32 %v1444_v8, %v747_v11  ;;  %v1454_v8 = vld [vmem:[%s3095_s0 + $0x78] sm:$0xff] }
 0x42f   :  { %2375 = vtanh.f32 %v748_v13 }
 0x430   :  { %2377 = vrcp.f32 %v744_v14 }
 0x439   :  { %v2376_v18 = vpop.eup %2375 }
 0x43a   :  { %v750_v19 = vsub.f32 %v2852_v39, %v2376_v18  ;;  %v2378_v20 = vpop.eup %2377 }
 0x43c   :  { %v751_v23 = vmul.f32 %v2378_v20, %v750_v19 }
 0x43e   :  { %v2908_v25 = vadd.f32 %v2376_v18, %v751_v23 }
 0x440   :  { %1447 = vst [vmem:[%s3096_s4 + $0x18] sm:$0xff] %v2908_v25  ;;  %824 = vmatmul.mubr.f32.vlgmr.msra.gmra.mrb[8].mxu0 %v2908_v25  ;;  %1781 = vmatmul.mubr.f32.vlgmr.msra.gmra.mrb[8].mxu1 %v2908_v25 }
 0x441   :  { %2171 = vmatpush1.bf16.msra.mxu0 %v2471_v9  ;;  %2202 = vmatpush3.bf16.msra.mxu1 %v2530_v29 }
 0x442   :  { %2173 = vmatprep.subr.bf16.mxu0 %v2473_v10  ;;  %2203 = vmatprep.subr.bf16.mxu1 %v2419_v3 }
 0x443   :  { %990 = vmatprep.mubr.f32.mxu0 %v2420_v4  ;;  %1815 = vmatprep.mubr.msk.f32.mxu1 %vm2421_vm0, %v2420_v4 }
 0x445   :  { %2175 = vmatpush1.bf16.msra.mxu0 %v2489_v15  ;;  %2205 = vmatpush3.bf16.msra.mxu1 %v2554_v37 }
 0x446   :  { %2177 = vmatprep.subr.bf16.mxu0 %v2492_v16  ;;  %2206 = vmatprep.subr.bf16.mxu1 %v2419_v3 }
 0x449   :  { %2179 = vmatpush1.bf16.msra.mxu0 %v2507_v21  ;;  %2208 = vmatpush3.bf16.msra.mxu1 %v2582_v46 }
 0x44a   :  { %2181 = vmatprep.subr.bf16.mxu0 %v2510_v22  ;;  %2209 = vmatprep.subr.bf16.mxu1 %v2419_v3 }
 0x44d   :  { %2183 = vmatpush1.bf16.msra.mxu0 %v2536_v31  ;;  %2211 = vmatpush3.bf16.msra.mxu1 %v2610_v55 }
 0x44e   :  { %2185 = vmatprep.subr.bf16.mxu0 %v2542_v33  ;;  %2212 = vmatprep.subr.bf16.mxu1 %v2419_v3 }
 0x451   :  { %2187 = vmatpush1.bf16.msra.mxu0 %v2567_v41  ;;  %2214 = vmatpush3.bf16.msra.mxu1 %v2635_v63 }
 0x452   :  { %2189 = vmatprep.subr.bf16.mxu0 %v2570_v42  ;;  %2215 = vmatprep.subr.bf16.mxu1 %v2419_v3 }
 0x455   :  { %2191 = vmatpush1.bf16.msra.mxu0 %v2595_v50  ;;  %2217 = vmatpush3.bf16.msra.mxu1 %v2649_v6 }
 0x456   :  { %2193 = vmatprep.subr.bf16.mxu0 %v2598_v51  ;;  %2218 = vmatprep.subr.bf16.mxu1 %v2419_v3 }
 0x459   :  { %2195 = vmatpush1.bf16.msra.mxu0 %v2623_v59  ;;  %2220 = vmatpush3.bf16.msra.mxu1 %v2665_v12 }
 0x45a   :  { %2197 = vmatprep.subr.bf16.mxu0 %v2626_v60  ;;  %2221 = vmatprep.subr.bf16.mxu1 %v2419_v3 }
 0x45d   :  { %2199 = vmatpush1.bf16.msra.mxu0 %v2645_v2  ;;  %2223 = vmatpush3.bf16.msra.mxu1 %v2679_v17 }
 0x45e   :  { %2225 = vmatprep.subr.bf16.mxu0 %v2458_v5  ;;  %2256 = vmatprep.subr.bf16.mxu1 %v2419_v3 }
 0x513   :  { %v825_v27 = vpop.f32.mrb[8].mxu0  ;;  %v896_v28 = vpop.f32.mrb[8].mxu1 }
 0x514   :  { %v826_v30 = vadd.f32 %v825_v27, %v2721_v24  ;;  %v827_v32 = vpop.f32.mrb[9].mxu0  ;;  %v1782_v35 = vpop.f32.mrb[9].mxu1  ;;  %v897_v52 = vadd.f32 %v896_v28, %v2733_v49 }
 0x515   :  { %v828_v39 = vadd.f32 %v827_v32, %v2727_v34 }
 0x516   :  { %v900_v36 = vadd.f32 %v1448_v26, %v826_v30 }
 0x517   :  { %v907_v43 = vadd.f32 %v1449_v40, %v828_v39 }
 0x518   :  { %v1451_v38 = vmul.f32 -1.442695, %v900_v36 }
 0x519   :  { %v1452_v44 = vmul.f32 -1.442695, %v907_v43 }
 0x51a   :  { %2379 = vpow2.f32 %v1451_v38  ;;  %v1456_v38 = vld [vmem:[%s3095_s0 + $0x88] sm:$0xff] }
 0x51b   :  { %2381 = vpow2.f32 %v1452_v44 }
 0x524   :  { %v2380_v45 = vpop.eup %2379 }
 0x525   :  { %v904_v47 = vadd.f32 1.0, %v2380_v45  ;;  %v2382_v48 = vpop.eup %2381 }
 0x526   :  { %v911_v58 = vadd.f32 1.0, %v2382_v48 }
 0x527   :  { %2383 = vrcp.f32 %v904_v47 }
 0x531   :  { %v2384_v53 = vpop.eup %2383 }
 0x532   :  { %v914_v56 = vmul.f32 %v2384_v53, %v897_v52 }
 0x534   :  { %v915_v57 = vadd.f32 %v1450_v54, %v914_v56  ;;  %v1466_v54 = vld [vmem:[%s3095_s0 + $0xa8] sm:$0xff] }
 0x536   :  { %2385 = vtanh.f32 %v915_v57 }
 0x537   :  { %2387 = vrcp.f32 %v911_v58 }
 0x540   :  { %v2386_v61 = vpop.eup %2385 }
 0x541   :  { %v917_v62 = vsub.f32 %v2908_v25, %v2386_v61  ;;  %v2388_v0 = vpop.eup %2387 }
 0x543   :  { %v918_v1 = vmul.f32 %v2388_v0, %v917_v62 }
 0x545   :  { %v2964_v7 = vadd.f32 %v2386_v61, %v918_v1 }
 0x547   :  { %1453 = vst [vmem:[%s3096_s4 + $0x20] sm:$0xff] %v2964_v7  ;;  %991 = vmatmul.mubr.f32.vlgmr.msra.gmra.mrb[10].mxu0 %v2964_v7  ;;  %1816 = vmatmul.mubr.f32.vlgmr.msra.gmra.mrb[10].mxu1 %v2964_v7 }
 0x548   :  { %2227 = vmatpush1.bf16.msra.mxu0 %v2471_v9  ;;  %2258 = vmatpush3.bf16.msra.mxu1 %v2530_v29 }
 0x549   :  { %2229 = vmatprep.subr.bf16.mxu0 %v2473_v10  ;;  %2259 = vmatprep.subr.bf16.mxu1 %v2419_v3 }
 0x54a   :  { %1157 = vmatprep.mubr.f32.mxu0 %v2420_v4  ;;  %1850 = vmatprep.mubr.msk.f32.mxu1 %vm2421_vm0, %v2420_v4 }
 0x54c   :  { %2231 = vmatpush1.bf16.msra.mxu0 %v2489_v15  ;;  %2261 = vmatpush3.bf16.msra.mxu1 %v2554_v37 }
 0x54d   :  { %2233 = vmatprep.subr.bf16.mxu0 %v2492_v16  ;;  %2262 = vmatprep.subr.bf16.mxu1 %v2419_v3 }
 0x550   :  { %2235 = vmatpush1.bf16.msra.mxu0 %v2507_v21  ;;  %2264 = vmatpush3.bf16.msra.mxu1 %v2582_v46 }
 0x551   :  { %2237 = vmatprep.subr.bf16.mxu0 %v2510_v22  ;;  %2265 = vmatprep.subr.bf16.mxu1 %v2419_v3 }
 0x554   :  { %2239 = vmatpush1.bf16.msra.mxu0 %v2536_v31  ;;  %2267 = vmatpush3.bf16.msra.mxu1 %v2610_v55 }
 0x555   :  { %2241 = vmatprep.subr.bf16.mxu0 %v2542_v33  ;;  %2268 = vmatprep.subr.bf16.mxu1 %v2419_v3 }
 0x558   :  { %2243 = vmatpush1.bf16.msra.mxu0 %v2567_v41  ;;  %2270 = vmatpush3.bf16.msra.mxu1 %v2635_v63 }
 0x559   :  { %2245 = vmatprep.subr.bf16.mxu0 %v2570_v42  ;;  %2271 = vmatprep.subr.bf16.mxu1 %v2419_v3 }
 0x55c   :  { %2247 = vmatpush1.bf16.msra.mxu0 %v2595_v50  ;;  %2273 = vmatpush3.bf16.msra.mxu1 %v2649_v6 }
 0x55d   :  { %2249 = vmatprep.subr.bf16.mxu0 %v2598_v51  ;;  %2274 = vmatprep.subr.bf16.mxu1 %v2419_v3 }
 0x560   :  { %2251 = vmatpush1.bf16.msra.mxu0 %v2623_v59  ;;  %2276 = vmatpush3.bf16.msra.mxu1 %v2665_v12 }
 0x561   :  { %2253 = vmatprep.subr.bf16.mxu0 %v2626_v60  ;;  %2277 = vmatprep.subr.bf16.mxu1 %v2419_v3 }
 0x564   :  { %2255 = vmatpush1.bf16.msra.mxu0 %v2645_v2  ;;  %2279 = vmatpush3.bf16.msra.mxu1 %v2679_v17 }
 0x565   :  { %2281 = vmatprep.subr.bf16.mxu0 %v2458_v5  ;;  %2312 = vmatprep.subr.bf16.mxu1 %v2419_v3  ;;  %v1455_v5 = vld [vmem:[%s3095_s0 + $0x80] sm:$0xff] }
 0x61a   :  { %v992_v11 = vpop.f32.mrb[10].mxu0  ;;  %v1063_v13 = vpop.f32.mrb[10].mxu1 }
 0x61b   :  { %v993_v14 = vadd.f32 %v992_v11, %v2721_v24  ;;  %v994_v18 = vpop.f32.mrb[11].mxu0  ;;  %v1817_v19 = vpop.f32.mrb[11].mxu1  ;;  %v1064_v35 = vadd.f32 %v1063_v13, %v2733_v49 }
 0x61c   :  { %v995_v25 = vadd.f32 %v994_v18, %v2727_v34 }
 0x61d   :  { %v1067_v20 = vadd.f32 %v1454_v8, %v993_v14  ;;  %v1467_v8 = vld [vmem:[%s3095_s0 + $0xb0] sm:$0xff] }
 0x61e   :  { %v1074_v26 = vadd.f32 %v1455_v5, %v995_v25 }
 0x61f   :  { %v1457_v23 = vmul.f32 -1.442695, %v1067_v20 }
 0x620   :  { %v1458_v27 = vmul.f32 -1.442695, %v1074_v26 }
 0x621   :  { %2389 = vpow2.f32 %v1457_v23  ;;  %v1468_v23 = vld [vmem:[%s3095_s0 + $0xb8] sm:$0xff] }
 0x622   :  { %2391 = vpow2.f32 %v1458_v27 }
 0x62b   :  { %v2390_v28 = vpop.eup %2389 }
 0x62c   :  { %v1071_v30 = vadd.f32 1.0, %v2390_v28  ;;  %v2392_v32 = vpop.eup %2391 }
 0x62d   :  { %v1078_v43 = vadd.f32 1.0, %v2392_v32 }
 0x62e   :  { %2393 = vrcp.f32 %v1071_v30 }
 0x638   :  { %v2394_v36 = vpop.eup %2393 }
 0x639   :  { %v1081_v39 = vmul.f32 %v2394_v36, %v1064_v35 }
 0x63b   :  { %v1082_v40 = vadd.f32 %v1456_v38, %v1081_v39 }
 0x63d   :  { %2395 = vtanh.f32 %v1082_v40 }
 0x63e   :  { %2397 = vrcp.f32 %v1078_v43 }
 0x647   :  { %v2396_v44 = vpop.eup %2395 }
 0x648   :  { %v1084_v45 = vsub.f32 %v2964_v7, %v2396_v44  ;;  %v2398_v47 = vpop.eup %2397 }
 0x64a   :  { %v1085_v48 = vmul.f32 %v2398_v47, %v1084_v45 }
 0x64c   :  { %v3020_v52 = vadd.f32 %v2396_v44, %v1085_v48 }
 0x64e   :  { %1459 = vst [vmem:[%s3096_s4 + $0x28] sm:$0xff] %v3020_v52  ;;  %1158 = vmatmul.mubr.f32.vlgmr.msra.gmra.mrb[12].mxu0 %v3020_v52  ;;  %1851 = vmatmul.mubr.f32.vlgmr.msra.gmra.mrb[12].mxu1 %v3020_v52 }
 0x64f   :  { %2283 = vmatpush1.bf16.msra.mxu0 %v2471_v9  ;;  %2314 = vmatpush3.bf16.msra.mxu1 %v2530_v29 }
 0x650   :  { %2285 = vmatprep.subr.bf16.mxu0 %v2473_v10  ;;  %2315 = vmatprep.subr.bf16.mxu1 %v2419_v3 }
 0x651   :  { %1324 = vmatprep.mubr.f32.mxu0 %v2420_v4  ;;  %1885 = vmatprep.mubr.msk.f32.mxu1 %vm2421_vm0, %v2420_v4  ;;  %v1460_v4 = vld [vmem:[%s3095_s0 + $0x90] sm:$0xff] }
 0x653   :  { %2287 = vmatpush1.bf16.msra.mxu0 %v2489_v15  ;;  %2317 = vmatpush3.bf16.msra.mxu1 %v2554_v37 }
 0x654   :  { %2289 = vmatprep.subr.bf16.mxu0 %v2492_v16  ;;  %2318 = vmatprep.subr.bf16.mxu1 %v2419_v3 }
 0x657   :  { %2291 = vmatpush1.bf16.msra.mxu0 %v2507_v21  ;;  %2320 = vmatpush3.bf16.msra.mxu1 %v2582_v46 }
 0x658   :  { %2293 = vmatprep.subr.bf16.mxu0 %v2510_v22  ;;  %2321 = vmatprep.subr.bf16.mxu1 %v2419_v3 }
 0x65b   :  { %2295 = vmatpush1.bf16.msra.mxu0 %v2536_v31  ;;  %2323 = vmatpush3.bf16.msra.mxu1 %v2610_v55  ;;  %v1462_v55 = vld [vmem:[%s3095_s0 + $0xa0] sm:$0xff] }
 0x65c   :  { %2297 = vmatprep.subr.bf16.mxu0 %v2542_v33  ;;  %2324 = vmatprep.subr.bf16.mxu1 %v2419_v3 }
 0x65f   :  { %2299 = vmatpush1.bf16.msra.mxu0 %v2567_v41  ;;  %2326 = vmatpush3.bf16.msra.mxu1 %v2635_v63 }
 0x660   :  { %2301 = vmatprep.subr.bf16.mxu0 %v2570_v42  ;;  %2327 = vmatprep.subr.bf16.mxu1 %v2419_v3 }
 0x663   :  { %2303 = vmatpush1.bf16.msra.mxu0 %v2595_v50  ;;  %2329 = vmatpush3.bf16.msra.mxu1 %v2649_v6 }
 0x664   :  { %2305 = vmatprep.subr.bf16.mxu0 %v2598_v51  ;;  %2330 = vmatprep.subr.bf16.mxu1 %v2419_v3 }
 0x667   :  { %2307 = vmatpush1.bf16.msra.mxu0 %v2623_v59  ;;  %2332 = vmatpush3.bf16.msra.mxu1 %v2665_v12 }
 0x668   :  { %2309 = vmatprep.subr.bf16.mxu0 %v2626_v60  ;;  %2333 = vmatprep.subr.bf16.mxu1 %v2419_v3  ;;  %v1461_v3 = vld [vmem:[%s3095_s0 + $0x98] sm:$0xff] }
 0x66b   :  { %2311 = vmatpush1.bf16.msra.mxu0 %v2645_v2  ;;  %2335 = vmatpush3.bf16.msra.mxu1 %v2679_v17 }
 0x721   :  { %v1159_v9 = vpop.f32.mrb[12].mxu0  ;;  %v1230_v10 = vpop.f32.mrb[12].mxu1 }
 0x722   :  { %v1160_v15 = vadd.f32 %v1159_v9, %v2721_v24  ;;  %v1161_v16 = vpop.f32.mrb[13].mxu0  ;;  %v1852_v21 = vpop.f32.mrb[13].mxu1  ;;  %v1231_v50 = vadd.f32 %v1230_v10, %v2733_v49 }
 0x723   :  { %v1162_v31 = vadd.f32 %v1161_v16, %v2727_v34 }
 0x724   :  { %v1234_v22 = vadd.f32 %v1460_v4, %v1160_v15 }
 0x725   :  { %v1241_v33 = vadd.f32 %v1461_v3, %v1162_v31 }
 0x726   :  { %v1463_v29 = vmul.f32 -1.442695, %v1234_v22 }
 0x727   :  { %v1464_v37 = vmul.f32 -1.442695, %v1241_v33 }
 0x728   :  { %2399 = vpow2.f32 %v1463_v29 }
 0x729   :  { %2401 = vpow2.f32 %v1464_v37 }
 0x732   :  { %v2400_v41 = vpop.eup %2399 }
 0x733   :  { %v1238_v42 = vadd.f32 1.0, %v2400_v41  ;;  %v2402_v46 = vpop.eup %2401 }
 0x734   :  { %v1245_v63 = vadd.f32 1.0, %v2402_v46 }
 0x735   :  { %2403 = vrcp.f32 %v1238_v42 }
 0x73f   :  { %v2404_v51 = vpop.eup %2403 }
 0x740   :  { %v1248_v59 = vmul.f32 %v2404_v51, %v1231_v50 }
 0x742   :  { %v1249_v60 = vadd.f32 %v1462_v55, %v1248_v59 }
 0x744   :  { %2405 = vtanh.f32 %v1249_v60 }
 0x745   :  { %2407 = vrcp.f32 %v1245_v63 }
 0x74e   :  { %v2406_v2 = vpop.eup %2405 }
 0x74f   :  { %v1251_v6 = vsub.f32 %v3020_v52, %v2406_v2  ;;  %v2408_v12 = vpop.eup %2407 }
 0x751   :  { %v1252_v17 = vmul.f32 %v2408_v12, %v1251_v6 }
 0x753   :  { %v1253_v53 = vadd.f32 %v2406_v2, %v1252_v17 }
 0x755   :  { %1465 = vst [vmem:[%s3096_s4 + $0x30] sm:$0xff] %v1253_v53  ;;  %1325 = vmatmul.mubr.f32.vlgmr.msra.gmra.mrb[14].mxu0 %v1253_v53  ;;  %1886 = vmatmul.mubr.f32.vlgmr.msra.gmra.mrb[14].mxu1 %v1253_v53 }
 0x828   :  { %v1326_v56 = vpop.f32.mrb[14].mxu0  ;;  %v1397_v57 = vpop.f32.mrb[14].mxu1 }
 0x829   :  { %v1327_v58 = vadd.f32 %v1326_v56, %v2721_v24  ;;  %v1328_v61 = vpop.f32.mrb[15].mxu0  ;;  %v1887_v62 = vpop.f32.mrb[15].mxu1  ;;  %v1398_v24 = vadd.f32 %v1397_v57, %v2733_v49 }
 0x82a   :  { %v1329_v7 = vadd.f32 %v1328_v61, %v2727_v34 }
 0x82b   :  { %v1401_v0 = vadd.f32 %v1466_v54, %v1327_v58 }
 0x82c   :  { %v1408_v11 = vadd.f32 %v1467_v8, %v1329_v7 }
 0x82d   :  { %v1469_v1 = vmul.f32 -1.442695, %v1401_v0 }
 0x82e   :  { %v1470_v13 = vmul.f32 -1.442695, %v1408_v11 }
 0x82f   :  { %2409 = vpow2.f32 %v1469_v1 }
 0x830   :  { %2411 = vpow2.f32 %v1470_v13 }
 0x839   :  { %v2410_v14 = vpop.eup %2409 }
 0x83a   :  { %v1405_v18 = vadd.f32 1.0, %v2410_v14  ;;  %v2412_v19 = vpop.eup %2411 }
 0x83b   :  { %v1412_v5 = vadd.f32 1.0, %v2412_v19 }
 0x83c   :  { %2413 = vrcp.f32 %v1405_v18 }
 0x846   :  { %v2414_v20 = vpop.eup %2413 }
 0x847   :  { %v1415_v25 = vmul.f32 %v2414_v20, %v1398_v24 }
 0x849   :  { %v1416_v34 = vadd.f32 %v1468_v23, %v1415_v25 }
 0x84b   :  { %2415 = vtanh.f32 %v1416_v34 }
 0x84c   :  { %2417 = vrcp.f32 %v1412_v5 }
 0x855   :  { %v2416_v26 = vpop.eup %2415 }
 0x856   :  { %v1418_v27 = vsub.f32 %v1253_v53, %v2416_v26  ;;  %v2418_v28 = vpop.eup %2417 }
 0x858   :  { %v1419_v30 = vmul.f32 %v2418_v28, %v1418_v27 }
 0x85a   :  { %v1420_v32 = vadd.f32 %v2416_v26, %v1419_v30 }
 0x85c   :  { %1471 = vst [vmem:[%s3096_s4 + $0x38] sm:$0xff] %v1420_v32 }

</bundles_post_ra>
